<compile_context>
chip_gen: v5e
topology: v5e:2x2
jax: 0.10.0
libtpu: 0.0.40
codegen_flags: <defaults>
</compile_context>

<pallas_src>
import math

import jax
import jax.numpy as jnp
from jax import lax
from jax.experimental import pallas as pl
from jax.experimental.pallas import tpu as pltpu

N_LAYERS = 2
MATMUL_DTYPE = jnp.bfloat16   # matmul operand / packed weight dtype (jnp.float32 for parity tests)
TIME_CHUNK = 4                # time-chunk length; small here so the toy demo exercises the
                              # multi-chunk streaming path.  For long sequences raise it
                              # (budget the (Tc, B, 4H) f32 scratch against VMEM, e.g. 16-64).


# ---------------------------------------------------------------------------
# Pallas kernel: one bidirectional LSTM layer, grid = (direction, time chunk)
# ---------------------------------------------------------------------------
def lstm_bidir_layer_kernel(x_ref, wih_ref, whh_ref, b_ref, h0_ref, c0_ref, fcw_ref,
                            out_ref, hn_ref, cn_ref, logit_ref,
                            gx_scr, h_scr, c_scr, hlast_scr):
    """Grid axis 0: direction (0=fwd, 1=bwd).  Grid axis 1: time chunk (index_map reverses
    the chunk order for the backward direction).

    x_ref   : (S, Tc, B, Din)  input streams for this chunk, original time order
    wih_ref : (1, S*Din, 4H)   bf16, this direction (pre-transposed)
    whh_ref : (1, H, 4H)       bf16, this direction (pre-transposed)
    b_ref   : (1, 1, 4H)       f32, b_ih + b_hh
    h0_ref  : (1, B, H)        initial hidden        c0_ref : (1, B, H) initial cell
    fcw_ref : (1, 1, H)        this direction's half of fc.weight
    out_ref : (1, Tc, B, H)    hidden at every original time step of this chunk
    hn_ref  : (1, B, H)        final hidden          cn_ref : (1, B, H) final cell
    logit_ref : (1, B, 1)      partial fc logit from h at original t = T-1
    gx_scr  : (Tc, B, 4H) f32  precomputed input projection (per chunk)
    h_scr, c_scr : (B, H) f32  recurrence carries (persist across chunks)
    hlast_scr    : (B, H) f32  h at original t = T-1 (persist across chunks)
    """
    S, Tc, B, Din = x_ref.shape
    H = whh_ref.shape[1]
    G = 4 * H
    d = pl.program_id(0)
    tc = pl.program_id(1)
    nc = pl.num_programs(1)

    # ---- init recurrence carries on the first chunk of each direction ----
    @pl.when(tc == 0)
    def _():
        h_scr[...] = h0_ref[0]
        c_scr[...] = c0_ref[0]

    # ---- phase 1: whole-chunk input projection, one big MXU matmul per input stream ----
    wih = wih_ref[0]                               # (S*Din, 4H)
    whh = whh_ref[0]                               # (H, 4H)
    mm_dtype = whh.dtype
    gx = jnp.broadcast_to(b_ref[0], (Tc * B, G))   # bias folded in once (f32)
    for s in range(S):                             # S is static (1 or 2): unrolled
        xs = x_ref[s].astype(mm_dtype).reshape(Tc * B, Din)
        gx = gx + jnp.dot(xs, wih[s * Din:(s + 1) * Din, :],
                          preferred_element_type=jnp.float32)
    gx_scr[...] = gx.reshape(Tc, B, G)

    # ---- phase 2: recurrence; per step only h @ W_hh + elementwise ----
    base = d * (Tc - 1)                            # fwd walks 0..Tc-1, bwd walks Tc-1..0
    sign = 1 - 2 * d                               # (pure scalar arithmetic, no per-step select)

    def step(t, carry):
        t_eff = base + sign * t
        gates = gx_scr[t_eff] + jnp.dot(h_scr[...].astype(mm_dtype), whh,
                                        preferred_element_type=jnp.float32)   # (B, 4H) f32
        sg = jax.nn.sigmoid(gates)                 # one full-width EUP op (i, f, -, o)
        i_g = sg[:, 0 * H:1 * H]
        f_g = sg[:, 1 * H:2 * H]
        o_g = sg[:, 3 * H:4 * H]
        g_g = jnp.tanh(gates[:, 2 * H:3 * H])
        c_new = f_g * c_scr[...] + i_g * g_g
        h_new = o_g * jnp.tanh(c_new)
        c_scr[...] = c_new
        h_scr[...] = h_new
        out_ref[0, t_eff] = h_new.astype(out_ref.dtype)
        return carry

    lax.fori_loop(0, Tc, step, 0, unroll=Tc <= 8)

    # ---- stash h at ORIGINAL time T-1 (lstm_out[:, -1] semantics) ----
    # Original chunk nc-1 is the LAST grid step for fwd and the FIRST for bwd.
    orig_chunk = tc + d * (nc - 1 - 2 * tc)

    @pl.when(orig_chunk == nc - 1)
    def _():
        hlast_scr[...] = out_ref[0, Tc - 1].astype(jnp.float32)

    # ---- finalize once, on the last chunk step of this direction ----
    @pl.when(tc == nc - 1)
    def _():
        hn_ref[0] = h_scr[...]
        cn_ref[0] = c_scr[...]
        logit_ref[0] = jnp.sum(hlast_scr[...] * fcw_ref[0], axis=-1, keepdims=True)


# ---------------------------------------------------------------------------
# Wrapper
# ---------------------------------------------------------------------------
def _single_buffered_spec(shape, index_map):
    """Per-direction constant blocks: single-buffer them (halves their VMEM footprint)."""
    if hasattr(pl, "Buffered"):
        try:
            return pl.BlockSpec(shape, index_map, pipeline_mode=pl.Buffered(1))
        except TypeError:
            pass
    return pl.BlockSpec(shape, index_map)


def _vmem_limit_bytes(entries):
    raw = sum(math.prod(shape) * jnp.dtype(dtype).itemsize * bufs
              for shape, dtype, bufs in entries)
    # 2x margin for (8,128) tile padding + compiler-internal scratch; floor 16 MiB, cap 100 MiB.
    return int(min(max(2 * raw + (2 << 20), 16 << 20), 100 << 20))


def lstm_bidir_layer(x_streams, wih, whh, b, h0, c0, fcw, *, time_chunk):
    """x_streams: (S, T, B, Din).  Returns out (2,T,B,H), hn (2,B,H), cn (2,B,H),
    logit_partial (2,B,1) with logit_partial[d] = sum(out[d, T-1] * fcw[d], -1)."""
    S, T, B, Din = x_streams.shape
    H = whh.shape[1]
    G = 4 * H
    Tc = time_chunk
    assert T % Tc == 0, (T, Tc)
    nc = T // Tc

    # Backward direction walks the time chunks in reverse original order.
    chunk_map = lambda d_, tc_: (0, tc_ + d_ * (nc - 1 - 2 * tc_), 0, 0)
    out_map = lambda d_, tc_: (d_, tc_ + d_ * (nc - 1 - 2 * tc_), 0, 0)
    per_dir = lambda d_, tc_: (d_, 0, 0)

    vmem_limit = _vmem_limit_bytes([
        ((S, Tc, B, Din), x_streams.dtype, 2),     # input chunk (double-buffered)
        ((S * Din, G), wih.dtype, 1),              # single-buffered per-direction constants
        ((H, G), whh.dtype, 1),
        ((1, G), b.dtype, 1),
        ((B, H), h0.dtype, 1), ((B, H), c0.dtype, 1),
        ((1, H), fcw.dtype, 1),
        ((Tc, B, H), jnp.float32, 2),              # output chunk
        ((B, H), jnp.float32, 2), ((B, H), jnp.float32, 2), ((B, 1), jnp.float32, 2),
        ((Tc, B, G), jnp.float32, 1),              # gx scratch
        ((B, H), jnp.float32, 3),                  # h / c / hlast scratch
    ])

    out_shapes = (jax.ShapeDtypeStruct((2, T, B, H), jnp.float32),
                  jax.ShapeDtypeStruct((2, B, H), jnp.float32),
                  jax.ShapeDtypeStruct((2, B, H), jnp.float32),
                  jax.ShapeDtypeStruct((2, B, 1), jnp.float32))

    return pl.pallas_call(
        lstm_bidir_layer_kernel,
        out_shape=out_shapes,
        grid=(2, nc),                               # (direction, time chunk)
        in_specs=[
            pl.BlockSpec((S, Tc, B, Din), chunk_map),
            _single_buffered_spec((1, S * Din, G), per_dir),
            _single_buffered_spec((1, H, G), per_dir),
            _single_buffered_spec((1, 1, G), per_dir),
            _single_buffered_spec((1, B, H), per_dir),
            _single_buffered_spec((1, B, H), per_dir),
            _single_buffered_spec((1, 1, H), per_dir),
        ],
        out_specs=(
            pl.BlockSpec((1, Tc, B, H), out_map),
            pl.BlockSpec((1, B, H), per_dir),
            pl.BlockSpec((1, B, H), per_dir),
            pl.BlockSpec((1, B, 1), per_dir),
        ),
        scratch_shapes=[
            pltpu.VMEM((Tc, B, G), jnp.float32),    # precomputed input-projection gates
            pltpu.VMEM((B, H), jnp.float32),        # h carry
            pltpu.VMEM((B, H), jnp.float32),        # c carry
            pltpu.VMEM((B, H), jnp.float32),        # h at original t = T-1
        ],
        compiler_params=pltpu.CompilerParams(
            dimension_semantics=("parallel", "arbitrary"),
            vmem_limit_bytes=vmem_limit),
    )(x_streams, wih, whh, b, h0, c0, fcw)


# ---------------------------------------------------------------------------
# BiLSTM forward (glue in plain JAX, hot path in Pallas)
# ---------------------------------------------------------------------------
def _time_chunk_for(T):
    tc = 1
    for c in range(1, min(T, TIME_CHUNK) + 1):
        if T % c == 0:
            tc = c
    return tc


@jax.jit
def bilstm_forward(params, tokens, lengths, hidden):
    """forward(x, hidden) with x = (tokens, lengths); lengths unused, as in the module."""
    del lengths
    h0_all, c0_all = hidden                         # (n_layers*2, B, H) each
    T, B = tokens.shape
    Tc = _time_chunk_for(T)

    # Embedding lookup (gather) stays in JAX glue; cast to matmul dtype for cheaper DMA.
    embeds = jnp.take(params["embedding"], tokens, axis=0)          # (T, B, E)
    x_streams = embeds[None].astype(params["w_ih_l0"].dtype)        # (1, T, B, E)

    hn_list, cn_list = [], []
    logit_partial = None
    for layer in range(N_LAYERS):
        out, hn, cn, logit_partial = lstm_bidir_layer(
            x_streams,
            params[f"w_ih_l{layer}"], params[f"w_hh_l{layer}"], params[f"b_l{layer}"],
            h0_all[2 * layer:2 * layer + 2], c0_all[2 * layer:2 * layer + 2],
            params["fc_w2"], time_chunk=Tc)
        hn_list.append(hn)
        cn_list.append(cn)
        x_streams = out                              # (2, T, B, H): stream 0 = fwd, 1 = bwd

    # Dropout: identity (eval).  fc+sigmoid: the per-direction partial logits were produced
    # in-kernel from the last ORIGINAL time step (lstm_out[:, -1]); finish here.
    logit = logit_partial[0] + logit_partial[1] + params["fc_b"]    # (B, 1)
    sig_out = jax.nn.sigmoid(logit)[:, 0]

    h_n = jnp.concatenate(hn_list, axis=0)
    c_n = jnp.concatenate(cn_list, axis=0)
    return sig_out, (h_n, c_n)


# ---------------------------------------------------------------------------
# Deterministic PyTorch-layout parameters + one-time packing
# ---------------------------------------------------------------------------
def make_params(key, vocab_size, embedding_dim, hidden_dim):
    keys = jax.random.split(key, 32)
    ki = iter(keys)
    k = 1.0 / jnp.sqrt(hidden_dim)
    raw = {}
    raw["embedding"] = jax.random.normal(next(ki), (vocab_size, embedding_dim),
                                         jnp.float32) * 0.1
    for layer in range(N_LAYERS):
        in_dim = embedding_dim if layer == 0 else 2 * hidden_dim
        for d in range(2):
            raw[f"w_ih_l{layer}_d{d}"] = jax.random.uniform(
                next(ki), (4 * hidden_dim, in_dim), jnp.float32, -k, k)
            raw[f"w_hh_l{layer}_d{d}"] = jax.random.uniform(
                next(ki), (4 * hidden_dim, hidden_dim), jnp.float32, -k, k)
            raw[f"b_ih_l{layer}_d{d}"] = jax.random.uniform(
                next(ki), (4 * hidden_dim,), jnp.float32, -k, k)
            raw[f"b_hh_l{layer}_d{d}"] = jax.random.uniform(
                next(ki), (4 * hidden_dim,), jnp.float32, -k, k)
    raw["fc_w"] = jax.random.uniform(next(ki), (1, 2 * hidden_dim), jnp.float32, -k, k)
    raw["fc_b"] = jax.random.uniform(next(ki), (1,), jnp.float32, -k, k)
    return raw


def pack_params(raw, hidden_dim):
    """Pre-transpose / stack / cast PyTorch-layout weights once (outside the hot path)."""
    p = {"embedding": raw["embedding"]}
    for layer in range(N_LAYERS):
        p[f"w_ih_l{layer}"] = jnp.stack(
            [raw[f"w_ih_l{layer}_d{d}"].T for d in range(2)], axis=0).astype(MATMUL_DTYPE)
        p[f"w_hh_l{layer}"] = jnp.stack(
            [raw[f"w_hh_l{layer}_d{d}"].T for d in range(2)], axis=0).astype(MATMUL_DTYPE)
        p[f"b_l{layer}"] = jnp.stack(
            [(raw[f"b_ih_l{layer}_d{d}"] + raw[f"b_hh_l{layer}_d{d}"]).reshape(1, -1)
             for d in range(2)], axis=0)
    # fc.weight (1, 2H) -> (2, 1, H): first half multiplies fwd features, second half bwd.
    p["fc_w2"] = raw["fc_w"].reshape(2, 1, hidden_dim)
    p["fc_b"] = raw["fc_b"].reshape(1, 1)
    return p


# ---------------------------------------------------------------------------
# Pure-JAX f32 reference (mirrors the PyTorch module's forward) for parity checking
# ---------------------------------------------------------------------------
def reference_forward(raw, tokens, hidden):
    h0_all, c0_all = hidden
    T, B = tokens.shape
    x = jnp.take(raw["embedding"], tokens, axis=0)          # (T, B, E)
    hs, cs = [], []
    for layer in range(N_LAYERS):
        outs = []
        for d in range(2):
            wih = raw[f"w_ih_l{layer}_d{d}"]
            whh = raw[f"w_hh_l{layer}_d{d}"]
            bias = raw[f"b_ih_l{layer}_d{d}"] + raw[f"b_hh_l{layer}_d{d}"]
            H = whh.shape[1]
            xs = x if d == 0 else x[::-1]

            def step(carry, xt, wih=wih, whh=whh, bias=bias, H=H):
                h, c = carry
                g = xt @ wih.T + h @ whh.T + bias
                i = jax.nn.sigmoid(g[:, :H])
                f = jax.nn.sigmoid(g[:, H:2 * H])
                gg = jnp.tanh(g[:, 2 * H:3 * H])
                o = jax.nn.sigmoid(g[:, 3 * H:])
                c = f * c + i * gg
                h = o * jnp.tanh(c)
                return (h, c), h

            (hT, cT), ys = lax.scan(step, (h0_all[2 * layer + d], c0_all[2 * layer + d]), xs)
            if d == 1:
                ys = ys[::-1]
            outs.append(ys)
            hs.append(hT)
            cs.append(cT)
        x = jnp.concatenate(outs, axis=-1)                   # (T, B, 2H)
    logit = x[T - 1] @ raw["fc_w"].T + raw["fc_b"]
    return jax.nn.sigmoid(logit)[:, 0], (jnp.stack(hs), jnp.stack(cs))


if __name__ == "__main__":
    vocab_size = 50
    embedding_dim = 32
    hidden_dim = 32
    batch_size = 8
    seq_len = 8

    key = jax.random.PRNGKey(0)
    pkey, tkey = jax.random.split(key)
    raw_params = make_params(pkey, vocab_size, embedding_dim, hidden_dim)
    params = pack_params(raw_params, hidden_dim)

    # x = (tokens, lengths); tokens are (seq, batch) as produced by the torchtext Field.
    tokens = jax.random.randint(tkey, (seq_len, batch_size), 0, vocab_size, jnp.int32)
    lengths = jnp.full((batch_size,), seq_len, jnp.int32)

    # init_hidden(batch_size): zeros of shape (n_layers*2, batch, hidden)
    hidden = (jnp.zeros((N_LAYERS * 2, batch_size, hidden_dim), jnp.float32),
              jnp.zeros((N_LAYERS * 2, batch_size, hidden_dim), jnp.float32))

    sig_out, (h_n, c_n) = bilstm_forward(params, tokens, lengths, hidden)
    jax.block_until_ready((sig_out, h_n, c_n))

    assert sig_out.shape == (batch_size,)
    assert h_n.shape == (N_LAYERS * 2, batch_size, hidden_dim)
    assert c_n.shape == (N_LAYERS * 2, batch_size, hidden_dim)
    assert bool(jnp.all(jnp.isfinite(sig_out)))

    # Numeric parity vs. pure-JAX f32 reference (bf16 matmul operands -> loose tolerance).
    sig_ref, (h_ref, c_ref) = reference_forward(raw_params, tokens, hidden)
    assert bool(jnp.max(jnp.abs(sig_out - sig_ref)) < 3e-2)
    assert bool(jnp.max(jnp.abs(h_n - h_ref)) < 3e-2)
    assert bool(jnp.max(jnp.abs(c_n - c_ref)) < 5e-2)

    print("KERNEL_OK")
</pallas_src>

<mosaic_0001>
module attributes {stable_mosaic.version = 11 : i64} {
  func.func @lstm_bidir_layer_kernel(%arg0: i32, %arg1: i32, %arg2: memref<1x4x8x32xbf16, #tpu.memory_space<vmem>>, %arg3: memref<1x32x128xbf16, #tpu.memory_space<vmem>>, %arg4: memref<1x32x128xbf16, #tpu.memory_space<vmem>>, %arg5: memref<1x1x128xf32, #tpu.memory_space<vmem>>, %arg6: memref<1x8x32xf32, #tpu.memory_space<vmem>>, %arg7: memref<1x8x32xf32, #tpu.memory_space<vmem>>, %arg8: memref<1x1x32xf32, #tpu.memory_space<vmem>>, %arg9: memref<1x4x8x32xf32, #tpu.memory_space<vmem>>, %arg10: memref<1x8x32xf32, #tpu.memory_space<vmem>>, %arg11: memref<1x8x32xf32, #tpu.memory_space<vmem>>, %arg12: memref<1x8x1xf32, #tpu.memory_space<vmem>>, %arg13: memref<4x8x128xf32, #tpu.memory_space<vmem>>, %arg14: memref<8x32xf32, #tpu.memory_space<vmem>>, %arg15: memref<8x32xf32, #tpu.memory_space<vmem>>, %arg16: memref<8x32xf32, #tpu.memory_space<vmem>>) attributes {dimension_semantics = [#tpu.dimension_semantics<parallel>, #tpu.dimension_semantics<arbitrary>], iteration_bounds = array<i64: 2, 2>, scalar_prefetch = 0 : i64, scratch_operands = 4 : i64, tpu.core_type = #tpu.core_type<tc>, window_params = [{transform_indices = @transform_0, window_bounds = array<i64: 1, 4, 8, 32>}, {pipeline_mode = #tpu.pipeline_mode<synchronous>, transform_indices = @transform_1, window_bounds = array<i64: 1, 32, 128>}, {pipeline_mode = #tpu.pipeline_mode<synchronous>, transform_indices = @transform_2, window_bounds = array<i64: 1, 32, 128>}, {pipeline_mode = #tpu.pipeline_mode<synchronous>, transform_indices = @transform_3, window_bounds = array<i64: 1, 1, 128>}, {pipeline_mode = #tpu.pipeline_mode<synchronous>, transform_indices = @transform_4, window_bounds = array<i64: 1, 8, 32>}, {pipeline_mode = #tpu.pipeline_mode<synchronous>, transform_indices = @transform_5, window_bounds = array<i64: 1, 8, 32>}, {pipeline_mode = #tpu.pipeline_mode<synchronous>, transform_indices = @transform_6, window_bounds = array<i64: 1, 1, 32>}, {transform_indices = @transform_7, window_bounds = array<i64: 1, 4, 8, 32>}, {transform_indices = @transform_8, window_bounds = array<i64: 1, 8, 32>}, {transform_indices = @transform_9, window_bounds = array<i64: 1, 8, 32>}, {transform_indices = @transform_10, window_bounds = array<i64: 1, 8, 1>}]} {
    %c0_i32 = arith.constant 0 : i32
    %0 = arith.cmpi eq, %arg1, %c0_i32 : i32
    %1 = arith.extui %0 : i1 to i32
    %c0_i32_0 = arith.constant 0 : i32
    %2 = arith.cmpi ne, %1, %c0_i32_0 : i32
    scf.if %2 {
      %c0_86 = arith.constant 0 : index
      %c0_87 = arith.constant 0 : index
      %c0_88 = arith.constant 0 : index
      %155 = vector.load %arg6[%c0_86, %c0_87, %c0_88] : memref<1x8x32xf32, #tpu.memory_space<vmem>>, vector<1x8x32xf32>
      %156 = vector.shape_cast %155 : vector<1x8x32xf32> to vector<8x32xf32>
      %c0_89 = arith.constant 0 : index
      %c0_90 = arith.constant 0 : index
      %157 = vector.load %arg14[%c0_89, %c0_90] : memref<8x32xf32, #tpu.memory_space<vmem>>, vector<8x32xf32>
      tpu.vector_store %arg14[%c0_89, %c0_90], %156 {strides = array<i32>} : memref<8x32xf32, #tpu.memory_space<vmem>>, vector<8x32xf32>,
      %c0_91 = arith.constant 0 : index
      %c0_92 = arith.constant 0 : index
      %c0_93 = arith.constant 0 : index
      %158 = vector.load %arg7[%c0_91, %c0_92, %c0_93] : memref<1x8x32xf32, #tpu.memory_space<vmem>>, vector<1x8x32xf32>
      %159 = vector.shape_cast %158 : vector<1x8x32xf32> to vector<8x32xf32>
      %c0_94 = arith.constant 0 : index
      %c0_95 = arith.constant 0 : index
      %160 = vector.load %arg15[%c0_94, %c0_95] : memref<8x32xf32, #tpu.memory_space<vmem>>, vector<8x32xf32>
      tpu.vector_store %arg15[%c0_94, %c0_95], %159 {strides = array<i32>} : memref<8x32xf32, #tpu.memory_space<vmem>>, vector<8x32xf32>,
    } else {
    }
    %c0 = arith.constant 0 : index
    %c0_1 = arith.constant 0 : index
    %c0_2 = arith.constant 0 : index
    %3 = vector.load %arg3[%c0, %c0_1, %c0_2] : memref<1x32x128xbf16, #tpu.memory_space<vmem>>, vector<1x32x128xbf16>
    %4 = vector.shape_cast %3 : vector<1x32x128xbf16> to vector<32x128xbf16>
    %c0_3 = arith.constant 0 : index
    %c0_4 = arith.constant 0 : index
    %c0_5 = arith.constant 0 : index
    %5 = vector.load %arg4[%c0_3, %c0_4, %c0_5] : memref<1x32x128xbf16, #tpu.memory_space<vmem>>, vector<1x32x128xbf16>
    %6 = vector.shape_cast %5 : vector<1x32x128xbf16> to vector<32x128xbf16>
    %c0_6 = arith.constant 0 : index
    %c0_7 = arith.constant 0 : index
    %c0_8 = arith.constant 0 : index
    %7 = vector.load %arg5[%c0_6, %c0_7, %c0_8] : memref<1x1x128xf32, #tpu.memory_space<vmem>>, vector<1x1x128xf32>
    %8 = vector.shape_cast %7 : vector<1x1x128xf32> to vector<1x128xf32>
    %9 = vector.shape_cast %8 : vector<1x128xf32> to vector<1x128xf32>
    %10 = vector.broadcast %9 : vector<1x128xf32> to vector<32x128xf32>
    %c0_9 = arith.constant 0 : index
    %c0_10 = arith.constant 0 : index
    %c0_11 = arith.constant 0 : index
    %c0_12 = arith.constant 0 : index
    %11 = vector.load %arg2[%c0_9, %c0_10, %c0_11, %c0_12] : memref<1x4x8x32xbf16, #tpu.memory_space<vmem>>, vector<1x4x8x32xbf16>
    %12 = vector.shape_cast %11 : vector<1x4x8x32xbf16> to vector<4x8x32xbf16>
    %13 = vector.shape_cast %12 : vector<4x8x32xbf16> to vector<32x32xbf16>
    %cst = arith.constant dense<0.000000e+00> : vector<32x128xf32>
    %14 = tpu.matmul %13, %4, %cst {dimension_numbers = #tpu.dot_dimension_numbers<[1], [0], [0], [1], [0, 0, 1, 1], [], []>} : vector<32x32xbf16>, vector<32x128xbf16>, vector<32x128xf32> -> vector<32x128xf32>
    %15 = arith.addf %10, %14 : vector<32x128xf32>
    %16 = vector.shape_cast %15 : vector<32x128xf32> to vector<4x8x128xf32>
    %c0_13 = arith.constant 0 : index
    %c0_14 = arith.constant 0 : index
    %c0_15 = arith.constant 0 : index
    %17 = vector.load %arg13[%c0_13, %c0_14, %c0_15] : memref<4x8x128xf32, #tpu.memory_space<vmem>>, vector<4x8x128xf32>
    tpu.vector_store %arg13[%c0_13, %c0_14, %c0_15], %16 {strides = array<i32>} : memref<4x8x128xf32, #tpu.memory_space<vmem>>, vector<4x8x128xf32>,
    %c3_i32 = arith.constant 3 : i32
    %18 = arith.muli %arg0, %c3_i32 : i32
    %c2_i32 = arith.constant 2 : i32
    %19 = arith.muli %c2_i32, %arg0 : i32
    %c1_i32 = arith.constant 1 : i32
    %20 = arith.subi %c1_i32, %19 : i32
    %c0_i32_16 = arith.constant 0 : i32
    %21 = arith.muli %20, %c0_i32_16 : i32
    %22 = arith.addi %18, %21 : i32
    %23 = arith.index_cast %22 : i32 to index
    %c0_17 = arith.constant 0 : index
    %c0_18 = arith.constant 0 : index
    %24 = vector.load %arg13[%23, %c0_17, %c0_18] : memref<4x8x128xf32, #tpu.memory_space<vmem>>, vector<1x8x128xf32>
    %25 = vector.shape_cast %24 : vector<1x8x128xf32> to vector<8x128xf32>
    %c0_19 = arith.constant 0 : index
    %c0_20 = arith.constant 0 : index
    %26 = vector.load %arg14[%c0_19, %c0_20] : memref<8x32xf32, #tpu.memory_space<vmem>>, vector<8x32xf32>
    %27 = arith.truncf %26 : vector<8x32xf32> to vector<8x32xbf16>
    %cst_21 = arith.constant dense<0.000000e+00> : vector<8x128xf32>
    %28 = tpu.matmul %27, %6, %cst_21 {dimension_numbers = #tpu.dot_dimension_numbers<[1], [0], [0], [1], [0, 0, 1, 1], [], []>} : vector<8x32xbf16>, vector<32x128xbf16>, vector<8x128xf32> -> vector<8x128xf32>
    %29 = arith.addf %25, %28 : vector<8x128xf32>
    %30 = arith.negf %29 : vector<8x128xf32>
    %31 = math.exp %30 : vector<8x128xf32>
    %cst_22 = arith.constant 1.000000e+00 : f32
    %32 = vector.broadcast %cst_22 : f32 to vector<8x128xf32>
    %33 = arith.addf %32, %31 : vector<8x128xf32>
    %34 = arith.divf %32, %33 : vector<8x128xf32>
    %35 = vector.extract_strided_slice %34 {offsets = [0, 0], sizes = [8, 32], strides = [1, 1]} : vector<8x128xf32> to vector<8x32xf32>
    %36 = vector.extract_strided_slice %34 {offsets = [0, 32], sizes = [8, 32], strides = [1, 1]} : vector<8x128xf32> to vector<8x32xf32>
    %37 = vector.extract_strided_slice %34 {offsets = [0, 96], sizes = [8, 32], strides = [1, 1]} : vector<8x128xf32> to vector<8x32xf32>
    %38 = vector.extract_strided_slice %29 {offsets = [0, 64], sizes = [8, 32], strides = [1, 1]} : vector<8x128xf32> to vector<8x32xf32>
    %39 = math.tanh %38 : vector<8x32xf32>
    %c0_23 = arith.constant 0 : index
    %c0_24 = arith.constant 0 : index
    %40 = vector.load %arg15[%c0_23, %c0_24] : memref<8x32xf32, #tpu.memory_space<vmem>>, vector<8x32xf32>
    %41 = arith.mulf %36, %40 : vector<8x32xf32>
    %42 = arith.mulf %35, %39 : vector<8x32xf32>
    %43 = arith.addf %41, %42 : vector<8x32xf32>
    %44 = math.tanh %43 : vector<8x32xf32>
    %45 = arith.mulf %37, %44 : vector<8x32xf32>
    %c0_25 = arith.constant 0 : index
    %c0_26 = arith.constant 0 : index
    %46 = vector.load %arg15[%c0_25, %c0_26] : memref<8x32xf32, #tpu.memory_space<vmem>>, vector<8x32xf32>
    tpu.vector_store %arg15[%c0_25, %c0_26], %43 {strides = array<i32>} : memref<8x32xf32, #tpu.memory_space<vmem>>, vector<8x32xf32>,
    %c0_27 = arith.constant 0 : index
    %c0_28 = arith.constant 0 : index
    %47 = vector.load %arg14[%c0_27, %c0_28] : memref<8x32xf32, #tpu.memory_space<vmem>>, vector<8x32xf32>
    tpu.vector_store %arg14[%c0_27, %c0_28], %45 {strides = array<i32>} : memref<8x32xf32, #tpu.memory_space<vmem>>, vector<8x32xf32>,
    %c0_29 = arith.constant 0 : index
    %48 = arith.index_cast %22 : i32 to index
    %c0_30 = arith.constant 0 : index
    %c0_31 = arith.constant 0 : index
    %49 = vector.load %arg9[%c0_29, %48, %c0_30, %c0_31] : memref<1x4x8x32xf32, #tpu.memory_space<vmem>>, vector<1x1x8x32xf32>
    %50 = vector.shape_cast %49 : vector<1x1x8x32xf32> to vector<8x32xf32>
    %51 = vector.shape_cast %45 : vector<8x32xf32> to vector<1x1x8x32xf32>
    tpu.vector_store %arg9[%c0_29, %48, %c0_30, %c0_31], %51 {strides = array<i32>} : memref<1x4x8x32xf32, #tpu.memory_space<vmem>>, vector<1x1x8x32xf32>,
    %c1_i32_32 = arith.constant 1 : i32
    %52 = arith.muli %20, %c1_i32_32 : i32
    %53 = arith.addi %18, %52 : i32
    %54 = arith.index_cast %53 : i32 to index
    %c0_33 = arith.constant 0 : index
    %c0_34 = arith.constant 0 : index
    %55 = vector.load %arg13[%54, %c0_33, %c0_34] : memref<4x8x128xf32, #tpu.memory_space<vmem>>, vector<1x8x128xf32>
    %56 = vector.shape_cast %55 : vector<1x8x128xf32> to vector<8x128xf32>
    %c0_35 = arith.constant 0 : index
    %c0_36 = arith.constant 0 : index
    %57 = vector.load %arg14[%c0_35, %c0_36] : memref<8x32xf32, #tpu.memory_space<vmem>>, vector<8x32xf32>
    %58 = arith.truncf %57 : vector<8x32xf32> to vector<8x32xbf16>
    %cst_37 = arith.constant dense<0.000000e+00> : vector<8x128xf32>
    %59 = tpu.matmul %58, %6, %cst_37 {dimension_numbers = #tpu.dot_dimension_numbers<[1], [0], [0], [1], [0, 0, 1, 1], [], []>} : vector<8x32xbf16>, vector<32x128xbf16>, vector<8x128xf32> -> vector<8x128xf32>
    %60 = arith.addf %56, %59 : vector<8x128xf32>
    %61 = arith.negf %60 : vector<8x128xf32>
    %62 = math.exp %61 : vector<8x128xf32>
    %cst_38 = arith.constant 1.000000e+00 : f32
    %63 = vector.broadcast %cst_38 : f32 to vector<8x128xf32>
    %64 = arith.addf %63, %62 : vector<8x128xf32>
    %65 = arith.divf %63, %64 : vector<8x128xf32>
    %66 = vector.extract_strided_slice %65 {offsets = [0, 0], sizes = [8, 32], strides = [1, 1]} : vector<8x128xf32> to vector<8x32xf32>
    %67 = vector.extract_strided_slice %65 {offsets = [0, 32], sizes = [8, 32], strides = [1, 1]} : vector<8x128xf32> to vector<8x32xf32>
    %68 = vector.extract_strided_slice %65 {offsets = [0, 96], sizes = [8, 32], strides = [1, 1]} : vector<8x128xf32> to vector<8x32xf32>
    %69 = vector.extract_strided_slice %60 {offsets = [0, 64], sizes = [8, 32], strides = [1, 1]} : vector<8x128xf32> to vector<8x32xf32>
    %70 = math.tanh %69 : vector<8x32xf32>
    %c0_39 = arith.constant 0 : index
    %c0_40 = arith.constant 0 : index
    %71 = vector.load %arg15[%c0_39, %c0_40] : memref<8x32xf32, #tpu.memory_space<vmem>>, vector<8x32xf32>
    %72 = arith.mulf %67, %71 : vector<8x32xf32>
    %73 = arith.mulf %66, %70 : vector<8x32xf32>
    %74 = arith.addf %72, %73 : vector<8x32xf32>
    %75 = math.tanh %74 : vector<8x32xf32>
    %76 = arith.mulf %68, %75 : vector<8x32xf32>
    %c0_41 = arith.constant 0 : index
    %c0_42 = arith.constant 0 : index
    %77 = vector.load %arg15[%c0_41, %c0_42] : memref<8x32xf32, #tpu.memory_space<vmem>>, vector<8x32xf32>
    tpu.vector_store %arg15[%c0_41, %c0_42], %74 {strides = array<i32>} : memref<8x32xf32, #tpu.memory_space<vmem>>, vector<8x32xf32>,
    %c0_43 = arith.constant 0 : index
    %c0_44 = arith.constant 0 : index
    %78 = vector.load %arg14[%c0_43, %c0_44] : memref<8x32xf32, #tpu.memory_space<vmem>>, vector<8x32xf32>
    tpu.vector_store %arg14[%c0_43, %c0_44], %76 {strides = array<i32>} : memref<8x32xf32, #tpu.memory_space<vmem>>, vector<8x32xf32>,
    %c0_45 = arith.constant 0 : index
    %79 = arith.index_cast %53 : i32 to index
    %c0_46 = arith.constant 0 : index
    %c0_47 = arith.constant 0 : index
    %80 = vector.load %arg9[%c0_45, %79, %c0_46, %c0_47] : memref<1x4x8x32xf32, #tpu.memory_space<vmem>>, vector<1x1x8x32xf32>
    %81 = vector.shape_cast %80 : vector<1x1x8x32xf32> to vector<8x32xf32>
    %82 = vector.shape_cast %76 : vector<8x32xf32> to vector<1x1x8x32xf32>
    tpu.vector_store %arg9[%c0_45, %79, %c0_46, %c0_47], %82 {strides = array<i32>} : memref<1x4x8x32xf32, #tpu.memory_space<vmem>>, vector<1x1x8x32xf32>,
    %c2_i32_48 = arith.constant 2 : i32
    %83 = arith.muli %20, %c2_i32_48 : i32
    %84 = arith.addi %18, %83 : i32
    %85 = arith.index_cast %84 : i32 to index
    %c0_49 = arith.constant 0 : index
    %c0_50 = arith.constant 0 : index
    %86 = vector.load %arg13[%85, %c0_49, %c0_50] : memref<4x8x128xf32, #tpu.memory_space<vmem>>, vector<1x8x128xf32>
    %87 = vector.shape_cast %86 : vector<1x8x128xf32> to vector<8x128xf32>
    %c0_51 = arith.constant 0 : index
    %c0_52 = arith.constant 0 : index
    %88 = vector.load %arg14[%c0_51, %c0_52] : memref<8x32xf32, #tpu.memory_space<vmem>>, vector<8x32xf32>
    %89 = arith.truncf %88 : vector<8x32xf32> to vector<8x32xbf16>
    %cst_53 = arith.constant dense<0.000000e+00> : vector<8x128xf32>
    %90 = tpu.matmul %89, %6, %cst_53 {dimension_numbers = #tpu.dot_dimension_numbers<[1], [0], [0], [1], [0, 0, 1, 1], [], []>} : vector<8x32xbf16>, vector<32x128xbf16>, vector<8x128xf32> -> vector<8x128xf32>
    %91 = arith.addf %87, %90 : vector<8x128xf32>
    %92 = arith.negf %91 : vector<8x128xf32>
    %93 = math.exp %92 : vector<8x128xf32>
    %cst_54 = arith.constant 1.000000e+00 : f32
    %94 = vector.broadcast %cst_54 : f32 to vector<8x128xf32>
    %95 = arith.addf %94, %93 : vector<8x128xf32>
    %96 = arith.divf %94, %95 : vector<8x128xf32>
    %97 = vector.extract_strided_slice %96 {offsets = [0, 0], sizes = [8, 32], strides = [1, 1]} : vector<8x128xf32> to vector<8x32xf32>
    %98 = vector.extract_strided_slice %96 {offsets = [0, 32], sizes = [8, 32], strides = [1, 1]} : vector<8x128xf32> to vector<8x32xf32>
    %99 = vector.extract_strided_slice %96 {offsets = [0, 96], sizes = [8, 32], strides = [1, 1]} : vector<8x128xf32> to vector<8x32xf32>
    %100 = vector.extract_strided_slice %91 {offsets = [0, 64], sizes = [8, 32], strides = [1, 1]} : vector<8x128xf32> to vector<8x32xf32>
    %101 = math.tanh %100 : vector<8x32xf32>
    %c0_55 = arith.constant 0 : index
    %c0_56 = arith.constant 0 : index
    %102 = vector.load %arg15[%c0_55, %c0_56] : memref<8x32xf32, #tpu.memory_space<vmem>>, vector<8x32xf32>
    %103 = arith.mulf %98, %102 : vector<8x32xf32>
    %104 = arith.mulf %97, %101 : vector<8x32xf32>
    %105 = arith.addf %103, %104 : vector<8x32xf32>
    %106 = math.tanh %105 : vector<8x32xf32>
    %107 = arith.mulf %99, %106 : vector<8x32xf32>
    %c0_57 = arith.constant 0 : index
    %c0_58 = arith.constant 0 : index
    %108 = vector.load %arg15[%c0_57, %c0_58] : memref<8x32xf32, #tpu.memory_space<vmem>>, vector<8x32xf32>
    tpu.vector_store %arg15[%c0_57, %c0_58], %105 {strides = array<i32>} : memref<8x32xf32, #tpu.memory_space<vmem>>, vector<8x32xf32>,
    %c0_59 = arith.constant 0 : index
    %c0_60 = arith.constant 0 : index
    %109 = vector.load %arg14[%c0_59, %c0_60] : memref<8x32xf32, #tpu.memory_space<vmem>>, vector<8x32xf32>
    tpu.vector_store %arg14[%c0_59, %c0_60], %107 {strides = array<i32>} : memref<8x32xf32, #tpu.memory_space<vmem>>, vector<8x32xf32>,
    %c0_61 = arith.constant 0 : index
    %110 = arith.index_cast %84 : i32 to index
    %c0_62 = arith.constant 0 : index
    %c0_63 = arith.constant 0 : index
    %111 = vector.load %arg9[%c0_61, %110, %c0_62, %c0_63] : memref<1x4x8x32xf32, #tpu.memory_space<vmem>>, vector<1x1x8x32xf32>
    %112 = vector.shape_cast %111 : vector<1x1x8x32xf32> to vector<8x32xf32>
    %113 = vector.shape_cast %107 : vector<8x32xf32> to vector<1x1x8x32xf32>
    tpu.vector_store %arg9[%c0_61, %110, %c0_62, %c0_63], %113 {strides = array<i32>} : memref<1x4x8x32xf32, #tpu.memory_space<vmem>>, vector<1x1x8x32xf32>,
    %c3_i32_64 = arith.constant 3 : i32
    %114 = arith.muli %20, %c3_i32_64 : i32
    %115 = arith.addi %18, %114 : i32
    %116 = arith.index_cast %115 : i32 to index
    %c0_65 = arith.constant 0 : index
    %c0_66 = arith.constant 0 : index
    %117 = vector.load %arg13[%116, %c0_65, %c0_66] : memref<4x8x128xf32, #tpu.memory_space<vmem>>, vector<1x8x128xf32>
    %118 = vector.shape_cast %117 : vector<1x8x128xf32> to vector<8x128xf32>
    %c0_67 = arith.constant 0 : index
    %c0_68 = arith.constant 0 : index
    %119 = vector.load %arg14[%c0_67, %c0_68] : memref<8x32xf32, #tpu.memory_space<vmem>>, vector<8x32xf32>
    %120 = arith.truncf %119 : vector<8x32xf32> to vector<8x32xbf16>
    %cst_69 = arith.constant dense<0.000000e+00> : vector<8x128xf32>
    %121 = tpu.matmul %120, %6, %cst_69 {dimension_numbers = #tpu.dot_dimension_numbers<[1], [0], [0], [1], [0, 0, 1, 1], [], []>} : vector<8x32xbf16>, vector<32x128xbf16>, vector<8x128xf32> -> vector<8x128xf32>
    %122 = arith.addf %118, %121 : vector<8x128xf32>
    %123 = arith.negf %122 : vector<8x128xf32>
    %124 = math.exp %123 : vector<8x128xf32>
    %cst_70 = arith.constant 1.000000e+00 : f32
    %125 = vector.broadcast %cst_70 : f32 to vector<8x128xf32>
    %126 = arith.addf %125, %124 : vector<8x128xf32>
    %127 = arith.divf %125, %126 : vector<8x128xf32>
    %128 = vector.extract_strided_slice %127 {offsets = [0, 0], sizes = [8, 32], strides = [1, 1]} : vector<8x128xf32> to vector<8x32xf32>
    %129 = vector.extract_strided_slice %127 {offsets = [0, 32], sizes = [8, 32], strides = [1, 1]} : vector<8x128xf32> to vector<8x32xf32>
    %130 = vector.extract_strided_slice %127 {offsets = [0, 96], sizes = [8, 32], strides = [1, 1]} : vector<8x128xf32> to vector<8x32xf32>
    %131 = vector.extract_strided_slice %122 {offsets = [0, 64], sizes = [8, 32], strides = [1, 1]} : vector<8x128xf32> to vector<8x32xf32>
    %132 = math.tanh %131 : vector<8x32xf32>
    %c0_71 = arith.constant 0 : index
    %c0_72 = arith.constant 0 : index
    %133 = vector.load %arg15[%c0_71, %c0_72] : memref<8x32xf32, #tpu.memory_space<vmem>>, vector<8x32xf32>
    %134 = arith.mulf %129, %133 : vector<8x32xf32>
    %135 = arith.mulf %128, %132 : vector<8x32xf32>
    %136 = arith.addf %134, %135 : vector<8x32xf32>
    %137 = math.tanh %136 : vector<8x32xf32>
    %138 = arith.mulf %130, %137 : vector<8x32xf32>
    %c0_73 = arith.constant 0 : index
    %c0_74 = arith.constant 0 : index
    %139 = vector.load %arg15[%c0_73, %c0_74] : memref<8x32xf32, #tpu.memory_space<vmem>>, vector<8x32xf32>
    tpu.vector_store %arg15[%c0_73, %c0_74], %136 {strides = array<i32>} : memref<8x32xf32, #tpu.memory_space<vmem>>, vector<8x32xf32>,
    %c0_75 = arith.constant 0 : index
    %c0_76 = arith.constant 0 : index
    %140 = vector.load %arg14[%c0_75, %c0_76] : memref<8x32xf32, #tpu.memory_space<vmem>>, vector<8x32xf32>
    tpu.vector_store %arg14[%c0_75, %c0_76], %138 {strides = array<i32>} : memref<8x32xf32, #tpu.memory_space<vmem>>, vector<8x32xf32>,
    %c0_77 = arith.constant 0 : index
    %141 = arith.index_cast %115 : i32 to index
    %c0_78 = arith.constant 0 : index
    %c0_79 = arith.constant 0 : index
    %142 = vector.load %arg9[%c0_77, %141, %c0_78, %c0_79] : memref<1x4x8x32xf32, #tpu.memory_space<vmem>>, vector<1x1x8x32xf32>
    %143 = vector.shape_cast %142 : vector<1x1x8x32xf32> to vector<8x32xf32>
    %144 = vector.shape_cast %138 : vector<8x32xf32> to vector<1x1x8x32xf32>
    tpu.vector_store %arg9[%c0_77, %141, %c0_78, %c0_79], %144 {strides = array<i32>} : memref<1x4x8x32xf32, #tpu.memory_space<vmem>>, vector<1x1x8x32xf32>,
    %c4_i32 = arith.constant 4 : i32
    %c2_i32_80 = arith.constant 2 : i32
    %145 = arith.muli %c2_i32_80, %arg1 : i32
    %c1_i32_81 = arith.constant 1 : i32
    %146 = arith.subi %c1_i32_81, %145 : i32
    %147 = arith.muli %arg0, %146 : i32
    %148 = arith.addi %arg1, %147 : i32
    %c1_i32_82 = arith.constant 1 : i32
    %149 = arith.cmpi eq, %148, %c1_i32_82 : i32
    %150 = arith.extui %149 : i1 to i32
    %c0_i32_83 = arith.constant 0 : i32
    %151 = arith.cmpi ne, %150, %c0_i32_83 : i32
    scf.if %151 {
      %c0_86 = arith.constant 0 : index
      %c3 = arith.constant 3 : index
      %c0_87 = arith.constant 0 : index
      %c0_88 = arith.constant 0 : index
      %155 = vector.load %arg9[%c0_86, %c3, %c0_87, %c0_88] : memref<1x4x8x32xf32, #tpu.memory_space<vmem>>, vector<1x1x8x32xf32>
      %156 = vector.shape_cast %155 : vector<1x1x8x32xf32> to vector<8x32xf32>
      %c0_89 = arith.constant 0 : index
      %c0_90 = arith.constant 0 : index
      %157 = vector.load %arg16[%c0_89, %c0_90] : memref<8x32xf32, #tpu.memory_space<vmem>>, vector<8x32xf32>
      tpu.vector_store %arg16[%c0_89, %c0_90], %156 {strides = array<i32>} : memref<8x32xf32, #tpu.memory_space<vmem>>, vector<8x32xf32>,
    } else {
    }
    %c1_i32_84 = arith.constant 1 : i32
    %152 = arith.cmpi eq, %arg1, %c1_i32_84 : i32
    %153 = arith.extui %152 : i1 to i32
    %c0_i32_85 = arith.constant 0 : i32
    %154 = arith.cmpi ne, %153, %c0_i32_85 : i32
    scf.if %154 {
      %c0_86 = arith.constant 0 : index
      %c0_87 = arith.constant 0 : index
      %155 = vector.load %arg14[%c0_86, %c0_87] : memref<8x32xf32, #tpu.memory_space<vmem>>, vector<8x32xf32>
      %c0_88 = arith.constant 0 : index
      %c0_89 = arith.constant 0 : index
      %c0_90 = arith.constant 0 : index
      %156 = vector.load %arg10[%c0_88, %c0_89, %c0_90] : memref<1x8x32xf32, #tpu.memory_space<vmem>>, vector<1x8x32xf32>
      %157 = vector.shape_cast %156 : vector<1x8x32xf32> to vector<8x32xf32>
      %158 = vector.shape_cast %155 : vector<8x32xf32> to vector<1x8x32xf32>
      tpu.vector_store %arg10[%c0_88, %c0_89, %c0_90], %158 {strides = array<i32>} : memref<1x8x32xf32, #tpu.memory_space<vmem>>, vector<1x8x32xf32>,
      %c0_91 = arith.constant 0 : index
      %c0_92 = arith.constant 0 : index
      %159 = vector.load %arg15[%c0_91, %c0_92] : memref<8x32xf32, #tpu.memory_space<vmem>>, vector<8x32xf32>
      %c0_93 = arith.constant 0 : index
      %c0_94 = arith.constant 0 : index
      %c0_95 = arith.constant 0 : index
      %160 = vector.load %arg11[%c0_93, %c0_94, %c0_95] : memref<1x8x32xf32, #tpu.memory_space<vmem>>, vector<1x8x32xf32>
      %161 = vector.shape_cast %160 : vector<1x8x32xf32> to vector<8x32xf32>
      %162 = vector.shape_cast %159 : vector<8x32xf32> to vector<1x8x32xf32>
      tpu.vector_store %arg11[%c0_93, %c0_94, %c0_95], %162 {strides = array<i32>} : memref<1x8x32xf32, #tpu.memory_space<vmem>>, vector<1x8x32xf32>,
      %c0_96 = arith.constant 0 : index
      %c0_97 = arith.constant 0 : index
      %163 = vector.load %arg16[%c0_96, %c0_97] : memref<8x32xf32, #tpu.memory_space<vmem>>, vector<8x32xf32>
      %c0_98 = arith.constant 0 : index
      %c0_99 = arith.constant 0 : index
      %c0_100 = arith.constant 0 : index
      %164 = vector.load %arg8[%c0_98, %c0_99, %c0_100] : memref<1x1x32xf32, #tpu.memory_space<vmem>>, vector<1x1x32xf32>
      %165 = vector.shape_cast %164 : vector<1x1x32xf32> to vector<1x32xf32>
      %166 = vector.broadcast %165 : vector<1x32xf32> to vector<8x32xf32>
      %167 = arith.mulf %163, %166 : vector<8x32xf32>
      %cst_101 = arith.constant dense<0.000000e+00> : vector<8xf32>
      %168 = vector.multi_reduction <add>, %167, %cst_101 [1] : vector<8x32xf32> to vector<8xf32>
      %169 = vector.shape_cast %168 : vector<8xf32> to vector<8x1xf32>
      %c0_102 = arith.constant 0 : index
      %c0_103 = arith.constant 0 : index
      %c0_104 = arith.constant 0 : index
      %170 = vector.load %arg12[%c0_102, %c0_103, %c0_104] : memref<1x8x1xf32, #tpu.memory_space<vmem>>, vector<1x8x1xf32>
      %171 = vector.shape_cast %170 : vector<1x8x1xf32> to vector<8x1xf32>
      %172 = vector.shape_cast %169 : vector<8x1xf32> to vector<1x8x1xf32>
      tpu.vector_store %arg12[%c0_102, %c0_103, %c0_104], %172 {strides = array<i32>} : memref<1x8x1xf32, #tpu.memory_space<vmem>>, vector<1x8x1xf32>,
    } else {
    }
    return
  }
  func.func @transform_0(%arg0: i32, %arg1: i32) -> (i32, i32, i32, i32) {
    %c2_i32 = arith.constant 2 : i32
    %0 = arith.muli %c2_i32, %arg1 : i32
    %c1_i32 = arith.constant 1 : i32
    %1 = arith.subi %c1_i32, %0 : i32
    %2 = arith.muli %arg0, %1 : i32
    %3 = arith.addi %arg1, %2 : i32
    %c0_i32 = arith.constant 0 : i32
    %c0_i32_0 = arith.constant 0 : i32
    %c0_i32_1 = arith.constant 0 : i32
    %c0_i32_2 = arith.constant 0 : i32
    return %c0_i32, %3, %c0_i32_0, %c0_i32_1 : i32, i32, i32, i32
  }
  func.func @transform_1(%arg0: i32, %arg1: i32) -> (i32, i32, i32) {
    %c0_i32 = arith.constant 0 : i32
    %c0_i32_0 = arith.constant 0 : i32
    %c0_i32_1 = arith.constant 0 : i32
    return %arg0, %c0_i32, %c0_i32_0 : i32, i32, i32
  }
  func.func @transform_2(%arg0: i32, %arg1: i32) -> (i32, i32, i32) {
    %c0_i32 = arith.constant 0 : i32
    %c0_i32_0 = arith.constant 0 : i32
    %c0_i32_1 = arith.constant 0 : i32
    return %arg0, %c0_i32, %c0_i32_0 : i32, i32, i32
  }
  func.func @transform_3(%arg0: i32, %arg1: i32) -> (i32, i32, i32) {
    %c0_i32 = arith.constant 0 : i32
    %c0_i32_0 = arith.constant 0 : i32
    %c0_i32_1 = arith.constant 0 : i32
    return %arg0, %c0_i32, %c0_i32_0 : i32, i32, i32
  }
  func.func @transform_4(%arg0: i32, %arg1: i32) -> (i32, i32, i32) {
    %c0_i32 = arith.constant 0 : i32
    %c0_i32_0 = arith.constant 0 : i32
    %c0_i32_1 = arith.constant 0 : i32
    return %arg0, %c0_i32, %c0_i32_0 : i32, i32, i32
  }
  func.func @transform_5(%arg0: i32, %arg1: i32) -> (i32, i32, i32) {
    %c0_i32 = arith.constant 0 : i32
    %c0_i32_0 = arith.constant 0 : i32
    %c0_i32_1 = arith.constant 0 : i32
    return %arg0, %c0_i32, %c0_i32_0 : i32, i32, i32
  }
  func.func @transform_6(%arg0: i32, %arg1: i32) -> (i32, i32, i32) {
    %c0_i32 = arith.constant 0 : i32
    %c0_i32_0 = arith.constant 0 : i32
    %c0_i32_1 = arith.constant 0 : i32
    return %arg0, %c0_i32, %c0_i32_0 : i32, i32, i32
  }
  func.func @transform_7(%arg0: i32, %arg1: i32) -> (i32, i32, i32, i32) {
    %c2_i32 = arith.constant 2 : i32
    %0 = arith.muli %c2_i32, %arg1 : i32
    %c1_i32 = arith.constant 1 : i32
    %1 = arith.subi %c1_i32, %0 : i32
    %2 = arith.muli %arg0, %1 : i32
    %3 = arith.addi %arg1, %2 : i32
    %c0_i32 = arith.constant 0 : i32
    %c0_i32_0 = arith.constant 0 : i32
    %c0_i32_1 = arith.constant 0 : i32
    return %arg0, %3, %c0_i32, %c0_i32_0 : i32, i32, i32, i32
  }
  func.func @transform_8(%arg0: i32, %arg1: i32) -> (i32, i32, i32) {
    %c0_i32 = arith.constant 0 : i32
    %c0_i32_0 = arith.constant 0 : i32
    %c0_i32_1 = arith.constant 0 : i32
    return %arg0, %c0_i32, %c0_i32_0 : i32, i32, i32
  }
  func.func @transform_9(%arg0: i32, %arg1: i32) -> (i32, i32, i32) {
    %c0_i32 = arith.constant 0 : i32
    %c0_i32_0 = arith.constant 0 : i32
    %c0_i32_1 = arith.constant 0 : i32
    return %arg0, %c0_i32, %c0_i32_0 : i32, i32, i32
  }
  func.func @transform_10(%arg0: i32, %arg1: i32) -> (i32, i32, i32) {
    %c0_i32 = arith.constant 0 : i32
    %c0_i32_0 = arith.constant 0 : i32
    %c0_i32_1 = arith.constant 0 : i32
    return %arg0, %c0_i32, %c0_i32_0 : i32, i32, i32
  }
}

module attributes {stable_mosaic.version = 11 : i64} {
  func.func @lstm_bidir_layer_kernel(%arg0: i32, %arg1: i32, %arg2: memref<2x4x8x32xf32, #tpu.memory_space<vmem>>, %arg3: memref<1x64x128xbf16, #tpu.memory_space<vmem>>, %arg4: memref<1x32x128xbf16, #tpu.memory_space<vmem>>, %arg5: memref<1x1x128xf32, #tpu.memory_space<vmem>>, %arg6: memref<1x8x32xf32, #tpu.memory_space<vmem>>, %arg7: memref<1x8x32xf32, #tpu.memory_space<vmem>>, %arg8: memref<1x1x32xf32, #tpu.memory_space<vmem>>, %arg9: memref<1x4x8x32xf32, #tpu.memory_space<vmem>>, %arg10: memref<1x8x32xf32, #tpu.memory_space<vmem>>, %arg11: memref<1x8x32xf32, #tpu.memory_space<vmem>>, %arg12: memref<1x8x1xf32, #tpu.memory_space<vmem>>, %arg13: memref<4x8x128xf32, #tpu.memory_space<vmem>>, %arg14: memref<8x32xf32, #tpu.memory_space<vmem>>, %arg15: memref<8x32xf32, #tpu.memory_space<vmem>>, %arg16: memref<8x32xf32, #tpu.memory_space<vmem>>) attributes {dimension_semantics = [#tpu.dimension_semantics<parallel>, #tpu.dimension_semantics<arbitrary>], iteration_bounds = array<i64: 2, 2>, scalar_prefetch = 0 : i64, scratch_operands = 4 : i64, tpu.core_type = #tpu.core_type<tc>, window_params = [{transform_indices = @transform_0, window_bounds = array<i64: 2, 4, 8, 32>}, {pipeline_mode = #tpu.pipeline_mode<synchronous>, transform_indices = @transform_1, window_bounds = array<i64: 1, 64, 128>}, {pipeline_mode = #tpu.pipeline_mode<synchronous>, transform_indices = @transform_2, window_bounds = array<i64: 1, 32, 128>}, {pipeline_mode = #tpu.pipeline_mode<synchronous>, transform_indices = @transform_3, window_bounds = array<i64: 1, 1, 128>}, {pipeline_mode = #tpu.pipeline_mode<synchronous>, transform_indices = @transform_4, window_bounds = array<i64: 1, 8, 32>}, {pipeline_mode = #tpu.pipeline_mode<synchronous>, transform_indices = @transform_5, window_bounds = array<i64: 1, 8, 32>}, {pipeline_mode = #tpu.pipeline_mode<synchronous>, transform_indices = @transform_6, window_bounds = array<i64: 1, 1, 32>}, {transform_indices = @transform_7, window_bounds = array<i64: 1, 4, 8, 32>}, {transform_indices = @transform_8, window_bounds = array<i64: 1, 8, 32>}, {transform_indices = @transform_9, window_bounds = array<i64: 1, 8, 32>}, {transform_indices = @transform_10, window_bounds = array<i64: 1, 8, 1>}]} {
    %c0_i32 = arith.constant 0 : i32
    %0 = arith.cmpi eq, %arg1, %c0_i32 : i32
    %1 = arith.extui %0 : i1 to i32
    %c0_i32_0 = arith.constant 0 : i32
    %2 = arith.cmpi ne, %1, %c0_i32_0 : i32
    scf.if %2 {
      %c0_90 = arith.constant 0 : index
      %c0_91 = arith.constant 0 : index
      %c0_92 = arith.constant 0 : index
      %164 = vector.load %arg6[%c0_90, %c0_91, %c0_92] : memref<1x8x32xf32, #tpu.memory_space<vmem>>, vector<1x8x32xf32>
      %165 = vector.shape_cast %164 : vector<1x8x32xf32> to vector<8x32xf32>
      %c0_93 = arith.constant 0 : index
      %c0_94 = arith.constant 0 : index
      %166 = vector.load %arg14[%c0_93, %c0_94] : memref<8x32xf32, #tpu.memory_space<vmem>>, vector<8x32xf32>
      tpu.vector_store %arg14[%c0_93, %c0_94], %165 {strides = array<i32>} : memref<8x32xf32, #tpu.memory_space<vmem>>, vector<8x32xf32>,
      %c0_95 = arith.constant 0 : index
      %c0_96 = arith.constant 0 : index
      %c0_97 = arith.constant 0 : index
      %167 = vector.load %arg7[%c0_95, %c0_96, %c0_97] : memref<1x8x32xf32, #tpu.memory_space<vmem>>, vector<1x8x32xf32>
      %168 = vector.shape_cast %167 : vector<1x8x32xf32> to vector<8x32xf32>
      %c0_98 = arith.constant 0 : index
      %c0_99 = arith.constant 0 : index
      %169 = vector.load %arg15[%c0_98, %c0_99] : memref<8x32xf32, #tpu.memory_space<vmem>>, vector<8x32xf32>
      tpu.vector_store %arg15[%c0_98, %c0_99], %168 {strides = array<i32>} : memref<8x32xf32, #tpu.memory_space<vmem>>, vector<8x32xf32>,
    } else {
    }
    %c0 = arith.constant 0 : index
    %c0_1 = arith.constant 0 : index
    %c0_2 = arith.constant 0 : index
    %3 = vector.load %arg3[%c0, %c0_1, %c0_2] : memref<1x64x128xbf16, #tpu.memory_space<vmem>>, vector<1x64x128xbf16>
    %4 = vector.shape_cast %3 : vector<1x64x128xbf16> to vector<64x128xbf16>
    %c0_3 = arith.constant 0 : index
    %c0_4 = arith.constant 0 : index
    %c0_5 = arith.constant 0 : index
    %5 = vector.load %arg4[%c0_3, %c0_4, %c0_5] : memref<1x32x128xbf16, #tpu.memory_space<vmem>>, vector<1x32x128xbf16>
    %6 = vector.shape_cast %5 : vector<1x32x128xbf16> to vector<32x128xbf16>
    %c0_6 = arith.constant 0 : index
    %c0_7 = arith.constant 0 : index
    %c0_8 = arith.constant 0 : index
    %7 = vector.load %arg5[%c0_6, %c0_7, %c0_8] : memref<1x1x128xf32, #tpu.memory_space<vmem>>, vector<1x1x128xf32>
    %8 = vector.shape_cast %7 : vector<1x1x128xf32> to vector<1x128xf32>
    %9 = vector.shape_cast %8 : vector<1x128xf32> to vector<1x128xf32>
    %10 = vector.broadcast %9 : vector<1x128xf32> to vector<32x128xf32>
    %c0_9 = arith.constant 0 : index
    %c0_10 = arith.constant 0 : index
    %c0_11 = arith.constant 0 : index
    %c0_12 = arith.constant 0 : index
    %11 = vector.load %arg2[%c0_9, %c0_10, %c0_11, %c0_12] : memref<2x4x8x32xf32, #tpu.memory_space<vmem>>, vector<1x4x8x32xf32>
    %12 = vector.shape_cast %11 : vector<1x4x8x32xf32> to vector<4x8x32xf32>
    %13 = arith.truncf %12 : vector<4x8x32xf32> to vector<4x8x32xbf16>
    %14 = vector.shape_cast %13 : vector<4x8x32xbf16> to vector<32x32xbf16>
    %15 = vector.extract_strided_slice %4 {offsets = [0, 0], sizes = [32, 128], strides = [1, 1]} : vector<64x128xbf16> to vector<32x128xbf16>
    %cst = arith.constant dense<0.000000e+00> : vector<32x128xf32>
    %16 = tpu.matmul %14, %15, %cst {dimension_numbers = #tpu.dot_dimension_numbers<[1], [0], [0], [1], [0, 0, 1, 1], [], []>} : vector<32x32xbf16>, vector<32x128xbf16>, vector<32x128xf32> -> vector<32x128xf32>
    %17 = arith.addf %10, %16 : vector<32x128xf32>
    %c1 = arith.constant 1 : index
    %c0_13 = arith.constant 0 : index
    %c0_14 = arith.constant 0 : index
    %c0_15 = arith.constant 0 : index
    %18 = vector.load %arg2[%c1, %c0_13, %c0_14, %c0_15] : memref<2x4x8x32xf32, #tpu.memory_space<vmem>>, vector<1x4x8x32xf32>
    %19 = vector.shape_cast %18 : vector<1x4x8x32xf32> to vector<4x8x32xf32>
    %20 = arith.truncf %19 : vector<4x8x32xf32> to vector<4x8x32xbf16>
    %21 = vector.shape_cast %20 : vector<4x8x32xbf16> to vector<32x32xbf16>
    %22 = vector.extract_strided_slice %4 {offsets = [32, 0], sizes = [32, 128], strides = [1, 1]} : vector<64x128xbf16> to vector<32x128xbf16>
    %cst_16 = arith.constant dense<0.000000e+00> : vector<32x128xf32>
    %23 = tpu.matmul %21, %22, %cst_16 {dimension_numbers = #tpu.dot_dimension_numbers<[1], [0], [0], [1], [0, 0, 1, 1], [], []>} : vector<32x32xbf16>, vector<32x128xbf16>, vector<32x128xf32> -> vector<32x128xf32>
    %24 = arith.addf %17, %23 : vector<32x128xf32>
    %25 = vector.shape_cast %24 : vector<32x128xf32> to vector<4x8x128xf32>
    %c0_17 = arith.constant 0 : index
    %c0_18 = arith.constant 0 : index
    %c0_19 = arith.constant 0 : index
    %26 = vector.load %arg13[%c0_17, %c0_18, %c0_19] : memref<4x8x128xf32, #tpu.memory_space<vmem>>, vector<4x8x128xf32>
    tpu.vector_store %arg13[%c0_17, %c0_18, %c0_19], %25 {strides = array<i32>} : memref<4x8x128xf32, #tpu.memory_space<vmem>>, vector<4x8x128xf32>,
    %c3_i32 = arith.constant 3 : i32
    %27 = arith.muli %arg0, %c3_i32 : i32
    %c2_i32 = arith.constant 2 : i32
    %28 = arith.muli %c2_i32, %arg0 : i32
    %c1_i32 = arith.constant 1 : i32
    %29 = arith.subi %c1_i32, %28 : i32
    %c0_i32_20 = arith.constant 0 : i32
    %30 = arith.muli %29, %c0_i32_20 : i32
    %31 = arith.addi %27, %30 : i32
    %32 = arith.index_cast %31 : i32 to index
    %c0_21 = arith.constant 0 : index
    %c0_22 = arith.constant 0 : index
    %33 = vector.load %arg13[%32, %c0_21, %c0_22] : memref<4x8x128xf32, #tpu.memory_space<vmem>>, vector<1x8x128xf32>
    %34 = vector.shape_cast %33 : vector<1x8x128xf32> to vector<8x128xf32>
    %c0_23 = arith.constant 0 : index
    %c0_24 = arith.constant 0 : index
    %35 = vector.load %arg14[%c0_23, %c0_24] : memref<8x32xf32, #tpu.memory_space<vmem>>, vector<8x32xf32>
    %36 = arith.truncf %35 : vector<8x32xf32> to vector<8x32xbf16>
    %cst_25 = arith.constant dense<0.000000e+00> : vector<8x128xf32>
    %37 = tpu.matmul %36, %6, %cst_25 {dimension_numbers = #tpu.dot_dimension_numbers<[1], [0], [0], [1], [0, 0, 1, 1], [], []>} : vector<8x32xbf16>, vector<32x128xbf16>, vector<8x128xf32> -> vector<8x128xf32>
    %38 = arith.addf %34, %37 : vector<8x128xf32>
    %39 = arith.negf %38 : vector<8x128xf32>
    %40 = math.exp %39 : vector<8x128xf32>
    %cst_26 = arith.constant 1.000000e+00 : f32
    %41 = vector.broadcast %cst_26 : f32 to vector<8x128xf32>
    %42 = arith.addf %41, %40 : vector<8x128xf32>
    %43 = arith.divf %41, %42 : vector<8x128xf32>
    %44 = vector.extract_strided_slice %43 {offsets = [0, 0], sizes = [8, 32], strides = [1, 1]} : vector<8x128xf32> to vector<8x32xf32>
    %45 = vector.extract_strided_slice %43 {offsets = [0, 32], sizes = [8, 32], strides = [1, 1]} : vector<8x128xf32> to vector<8x32xf32>
    %46 = vector.extract_strided_slice %43 {offsets = [0, 96], sizes = [8, 32], strides = [1, 1]} : vector<8x128xf32> to vector<8x32xf32>
    %47 = vector.extract_strided_slice %38 {offsets = [0, 64], sizes = [8, 32], strides = [1, 1]} : vector<8x128xf32> to vector<8x32xf32>
    %48 = math.tanh %47 : vector<8x32xf32>
    %c0_27 = arith.constant 0 : index
    %c0_28 = arith.constant 0 : index
    %49 = vector.load %arg15[%c0_27, %c0_28] : memref<8x32xf32, #tpu.memory_space<vmem>>, vector<8x32xf32>
    %50 = arith.mulf %45, %49 : vector<8x32xf32>
    %51 = arith.mulf %44, %48 : vector<8x32xf32>
    %52 = arith.addf %50, %51 : vector<8x32xf32>
    %53 = math.tanh %52 : vector<8x32xf32>
    %54 = arith.mulf %46, %53 : vector<8x32xf32>
    %c0_29 = arith.constant 0 : index
    %c0_30 = arith.constant 0 : index
    %55 = vector.load %arg15[%c0_29, %c0_30] : memref<8x32xf32, #tpu.memory_space<vmem>>, vector<8x32xf32>
    tpu.vector_store %arg15[%c0_29, %c0_30], %52 {strides = array<i32>} : memref<8x32xf32, #tpu.memory_space<vmem>>, vector<8x32xf32>,
    %c0_31 = arith.constant 0 : index
    %c0_32 = arith.constant 0 : index
    %56 = vector.load %arg14[%c0_31, %c0_32] : memref<8x32xf32, #tpu.memory_space<vmem>>, vector<8x32xf32>
    tpu.vector_store %arg14[%c0_31, %c0_32], %54 {strides = array<i32>} : memref<8x32xf32, #tpu.memory_space<vmem>>, vector<8x32xf32>,
    %c0_33 = arith.constant 0 : index
    %57 = arith.index_cast %31 : i32 to index
    %c0_34 = arith.constant 0 : index
    %c0_35 = arith.constant 0 : index
    %58 = vector.load %arg9[%c0_33, %57, %c0_34, %c0_35] : memref<1x4x8x32xf32, #tpu.memory_space<vmem>>, vector<1x1x8x32xf32>
    %59 = vector.shape_cast %58 : vector<1x1x8x32xf32> to vector<8x32xf32>
    %60 = vector.shape_cast %54 : vector<8x32xf32> to vector<1x1x8x32xf32>
    tpu.vector_store %arg9[%c0_33, %57, %c0_34, %c0_35], %60 {strides = array<i32>} : memref<1x4x8x32xf32, #tpu.memory_space<vmem>>, vector<1x1x8x32xf32>,
    %c1_i32_36 = arith.constant 1 : i32
    %61 = arith.muli %29, %c1_i32_36 : i32
    %62 = arith.addi %27, %61 : i32
    %63 = arith.index_cast %62 : i32 to index
    %c0_37 = arith.constant 0 : index
    %c0_38 = arith.constant 0 : index
    %64 = vector.load %arg13[%63, %c0_37, %c0_38] : memref<4x8x128xf32, #tpu.memory_space<vmem>>, vector<1x8x128xf32>
    %65 = vector.shape_cast %64 : vector<1x8x128xf32> to vector<8x128xf32>
    %c0_39 = arith.constant 0 : index
    %c0_40 = arith.constant 0 : index
    %66 = vector.load %arg14[%c0_39, %c0_40] : memref<8x32xf32, #tpu.memory_space<vmem>>, vector<8x32xf32>
    %67 = arith.truncf %66 : vector<8x32xf32> to vector<8x32xbf16>
    %cst_41 = arith.constant dense<0.000000e+00> : vector<8x128xf32>
    %68 = tpu.matmul %67, %6, %cst_41 {dimension_numbers = #tpu.dot_dimension_numbers<[1], [0], [0], [1], [0, 0, 1, 1], [], []>} : vector<8x32xbf16>, vector<32x128xbf16>, vector<8x128xf32> -> vector<8x128xf32>
    %69 = arith.addf %65, %68 : vector<8x128xf32>
    %70 = arith.negf %69 : vector<8x128xf32>
    %71 = math.exp %70 : vector<8x128xf32>
    %cst_42 = arith.constant 1.000000e+00 : f32
    %72 = vector.broadcast %cst_42 : f32 to vector<8x128xf32>
    %73 = arith.addf %72, %71 : vector<8x128xf32>
    %74 = arith.divf %72, %73 : vector<8x128xf32>
    %75 = vector.extract_strided_slice %74 {offsets = [0, 0], sizes = [8, 32], strides = [1, 1]} : vector<8x128xf32> to vector<8x32xf32>
    %76 = vector.extract_strided_slice %74 {offsets = [0, 32], sizes = [8, 32], strides = [1, 1]} : vector<8x128xf32> to vector<8x32xf32>
    %77 = vector.extract_strided_slice %74 {offsets = [0, 96], sizes = [8, 32], strides = [1, 1]} : vector<8x128xf32> to vector<8x32xf32>
    %78 = vector.extract_strided_slice %69 {offsets = [0, 64], sizes = [8, 32], strides = [1, 1]} : vector<8x128xf32> to vector<8x32xf32>
    %79 = math.tanh %78 : vector<8x32xf32>
    %c0_43 = arith.constant 0 : index
    %c0_44 = arith.constant 0 : index
    %80 = vector.load %arg15[%c0_43, %c0_44] : memref<8x32xf32, #tpu.memory_space<vmem>>, vector<8x32xf32>
    %81 = arith.mulf %76, %80 : vector<8x32xf32>
    %82 = arith.mulf %75, %79 : vector<8x32xf32>
    %83 = arith.addf %81, %82 : vector<8x32xf32>
    %84 = math.tanh %83 : vector<8x32xf32>
    %85 = arith.mulf %77, %84 : vector<8x32xf32>
    %c0_45 = arith.constant 0 : index
    %c0_46 = arith.constant 0 : index
    %86 = vector.load %arg15[%c0_45, %c0_46] : memref<8x32xf32, #tpu.memory_space<vmem>>, vector<8x32xf32>
    tpu.vector_store %arg15[%c0_45, %c0_46], %83 {strides = array<i32>} : memref<8x32xf32, #tpu.memory_space<vmem>>, vector<8x32xf32>,
    %c0_47 = arith.constant 0 : index
    %c0_48 = arith.constant 0 : index
    %87 = vector.load %arg14[%c0_47, %c0_48] : memref<8x32xf32, #tpu.memory_space<vmem>>, vector<8x32xf32>
    tpu.vector_store %arg14[%c0_47, %c0_48], %85 {strides = array<i32>} : memref<8x32xf32, #tpu.memory_space<vmem>>, vector<8x32xf32>,
    %c0_49 = arith.constant 0 : index
    %88 = arith.index_cast %62 : i32 to index
    %c0_50 = arith.constant 0 : index
    %c0_51 = arith.constant 0 : index
    %89 = vector.load %arg9[%c0_49, %88, %c0_50, %c0_51] : memref<1x4x8x32xf32, #tpu.memory_space<vmem>>, vector<1x1x8x32xf32>
    %90 = vector.shape_cast %89 : vector<1x1x8x32xf32> to vector<8x32xf32>
    %91 = vector.shape_cast %85 : vector<8x32xf32> to vector<1x1x8x32xf32>
    tpu.vector_store %arg9[%c0_49, %88, %c0_50, %c0_51], %91 {strides = array<i32>} : memref<1x4x8x32xf32, #tpu.memory_space<vmem>>, vector<1x1x8x32xf32>,
    %c2_i32_52 = arith.constant 2 : i32
    %92 = arith.muli %29, %c2_i32_52 : i32
    %93 = arith.addi %27, %92 : i32
    %94 = arith.index_cast %93 : i32 to index
    %c0_53 = arith.constant 0 : index
    %c0_54 = arith.constant 0 : index
    %95 = vector.load %arg13[%94, %c0_53, %c0_54] : memref<4x8x128xf32, #tpu.memory_space<vmem>>, vector<1x8x128xf32>
    %96 = vector.shape_cast %95 : vector<1x8x128xf32> to vector<8x128xf32>
    %c0_55 = arith.constant 0 : index
    %c0_56 = arith.constant 0 : index
    %97 = vector.load %arg14[%c0_55, %c0_56] : memref<8x32xf32, #tpu.memory_space<vmem>>, vector<8x32xf32>
    %98 = arith.truncf %97 : vector<8x32xf32> to vector<8x32xbf16>
    %cst_57 = arith.constant dense<0.000000e+00> : vector<8x128xf32>
    %99 = tpu.matmul %98, %6, %cst_57 {dimension_numbers = #tpu.dot_dimension_numbers<[1], [0], [0], [1], [0, 0, 1, 1], [], []>} : vector<8x32xbf16>, vector<32x128xbf16>, vector<8x128xf32> -> vector<8x128xf32>
    %100 = arith.addf %96, %99 : vector<8x128xf32>
    %101 = arith.negf %100 : vector<8x128xf32>
    %102 = math.exp %101 : vector<8x128xf32>
    %cst_58 = arith.constant 1.000000e+00 : f32
    %103 = vector.broadcast %cst_58 : f32 to vector<8x128xf32>
    %104 = arith.addf %103, %102 : vector<8x128xf32>
    %105 = arith.divf %103, %104 : vector<8x128xf32>
    %106 = vector.extract_strided_slice %105 {offsets = [0, 0], sizes = [8, 32], strides = [1, 1]} : vector<8x128xf32> to vector<8x32xf32>
    %107 = vector.extract_strided_slice %105 {offsets = [0, 32], sizes = [8, 32], strides = [1, 1]} : vector<8x128xf32> to vector<8x32xf32>
    %108 = vector.extract_strided_slice %105 {offsets = [0, 96], sizes = [8, 32], strides = [1, 1]} : vector<8x128xf32> to vector<8x32xf32>
    %109 = vector.extract_strided_slice %100 {offsets = [0, 64], sizes = [8, 32], strides = [1, 1]} : vector<8x128xf32> to vector<8x32xf32>
    %110 = math.tanh %109 : vector<8x32xf32>
    %c0_59 = arith.constant 0 : index
    %c0_60 = arith.constant 0 : index
    %111 = vector.load %arg15[%c0_59, %c0_60] : memref<8x32xf32, #tpu.memory_space<vmem>>, vector<8x32xf32>
    %112 = arith.mulf %107, %111 : vector<8x32xf32>
    %113 = arith.mulf %106, %110 : vector<8x32xf32>
    %114 = arith.addf %112, %113 : vector<8x32xf32>
    %115 = math.tanh %114 : vector<8x32xf32>
    %116 = arith.mulf %108, %115 : vector<8x32xf32>
    %c0_61 = arith.constant 0 : index
    %c0_62 = arith.constant 0 : index
    %117 = vector.load %arg15[%c0_61, %c0_62] : memref<8x32xf32, #tpu.memory_space<vmem>>, vector<8x32xf32>
    tpu.vector_store %arg15[%c0_61, %c0_62], %114 {strides = array<i32>} : memref<8x32xf32, #tpu.memory_space<vmem>>, vector<8x32xf32>,
    %c0_63 = arith.constant 0 : index
    %c0_64 = arith.constant 0 : index
    %118 = vector.load %arg14[%c0_63, %c0_64] : memref<8x32xf32, #tpu.memory_space<vmem>>, vector<8x32xf32>
    tpu.vector_store %arg14[%c0_63, %c0_64], %116 {strides = array<i32>} : memref<8x32xf32, #tpu.memory_space<vmem>>, vector<8x32xf32>,
    %c0_65 = arith.constant 0 : index
    %119 = arith.index_cast %93 : i32 to index
    %c0_66 = arith.constant 0 : index
    %c0_67 = arith.constant 0 : index
    %120 = vector.load %arg9[%c0_65, %119, %c0_66, %c0_67] : memref<1x4x8x32xf32, #tpu.memory_space<vmem>>, vector<1x1x8x32xf32>
    %121 = vector.shape_cast %120 : vector<1x1x8x32xf32> to vector<8x32xf32>
    %122 = vector.shape_cast %116 : vector<8x32xf32> to vector<1x1x8x32xf32>
    tpu.vector_store %arg9[%c0_65, %119, %c0_66, %c0_67], %122 {strides = array<i32>} : memref<1x4x8x32xf32, #tpu.memory_space<vmem>>, vector<1x1x8x32xf32>,
    %c3_i32_68 = arith.constant 3 : i32
    %123 = arith.muli %29, %c3_i32_68 : i32
    %124 = arith.addi %27, %123 : i32
    %125 = arith.index_cast %124 : i32 to index
    %c0_69 = arith.constant 0 : index
    %c0_70 = arith.constant 0 : index
    %126 = vector.load %arg13[%125, %c0_69, %c0_70] : memref<4x8x128xf32, #tpu.memory_space<vmem>>, vector<1x8x128xf32>
    %127 = vector.shape_cast %126 : vector<1x8x128xf32> to vector<8x128xf32>
    %c0_71 = arith.constant 0 : index
    %c0_72 = arith.constant 0 : index
    %128 = vector.load %arg14[%c0_71, %c0_72] : memref<8x32xf32, #tpu.memory_space<vmem>>, vector<8x32xf32>
    %129 = arith.truncf %128 : vector<8x32xf32> to vector<8x32xbf16>
    %cst_73 = arith.constant dense<0.000000e+00> : vector<8x128xf32>
    %130 = tpu.matmul %129, %6, %cst_73 {dimension_numbers = #tpu.dot_dimension_numbers<[1], [0], [0], [1], [0, 0, 1, 1], [], []>} : vector<8x32xbf16>, vector<32x128xbf16>, vector<8x128xf32> -> vector<8x128xf32>
    %131 = arith.addf %127, %130 : vector<8x128xf32>
    %132 = arith.negf %131 : vector<8x128xf32>
    %133 = math.exp %132 : vector<8x128xf32>
    %cst_74 = arith.constant 1.000000e+00 : f32
    %134 = vector.broadcast %cst_74 : f32 to vector<8x128xf32>
    %135 = arith.addf %134, %133 : vector<8x128xf32>
    %136 = arith.divf %134, %135 : vector<8x128xf32>
    %137 = vector.extract_strided_slice %136 {offsets = [0, 0], sizes = [8, 32], strides = [1, 1]} : vector<8x128xf32> to vector<8x32xf32>
    %138 = vector.extract_strided_slice %136 {offsets = [0, 32], sizes = [8, 32], strides = [1, 1]} : vector<8x128xf32> to vector<8x32xf32>
    %139 = vector.extract_strided_slice %136 {offsets = [0, 96], sizes = [8, 32], strides = [1, 1]} : vector<8x128xf32> to vector<8x32xf32>
    %140 = vector.extract_strided_slice %131 {offsets = [0, 64], sizes = [8, 32], strides = [1, 1]} : vector<8x128xf32> to vector<8x32xf32>
    %141 = math.tanh %140 : vector<8x32xf32>
    %c0_75 = arith.constant 0 : index
    %c0_76 = arith.constant 0 : index
    %142 = vector.load %arg15[%c0_75, %c0_76] : memref<8x32xf32, #tpu.memory_space<vmem>>, vector<8x32xf32>
    %143 = arith.mulf %138, %142 : vector<8x32xf32>
    %144 = arith.mulf %137, %141 : vector<8x32xf32>
    %145 = arith.addf %143, %144 : vector<8x32xf32>
    %146 = math.tanh %145 : vector<8x32xf32>
    %147 = arith.mulf %139, %146 : vector<8x32xf32>
    %c0_77 = arith.constant 0 : index
    %c0_78 = arith.constant 0 : index
    %148 = vector.load %arg15[%c0_77, %c0_78] : memref<8x32xf32, #tpu.memory_space<vmem>>, vector<8x32xf32>
    tpu.vector_store %arg15[%c0_77, %c0_78], %145 {strides = array<i32>} : memref<8x32xf32, #tpu.memory_space<vmem>>, vector<8x32xf32>,
    %c0_79 = arith.constant 0 : index
    %c0_80 = arith.constant 0 : index
    %149 = vector.load %arg14[%c0_79, %c0_80] : memref<8x32xf32, #tpu.memory_space<vmem>>, vector<8x32xf32>
    tpu.vector_store %arg14[%c0_79, %c0_80], %147 {strides = array<i32>} : memref<8x32xf32, #tpu.memory_space<vmem>>, vector<8x32xf32>,
    %c0_81 = arith.constant 0 : index
    %150 = arith.index_cast %124 : i32 to index
    %c0_82 = arith.constant 0 : index
    %c0_83 = arith.constant 0 : index
    %151 = vector.load %arg9[%c0_81, %150, %c0_82, %c0_83] : memref<1x4x8x32xf32, #tpu.memory_space<vmem>>, vector<1x1x8x32xf32>
    %152 = vector.shape_cast %151 : vector<1x1x8x32xf32> to vector<8x32xf32>
    %153 = vector.shape_cast %147 : vector<8x32xf32> to vector<1x1x8x32xf32>
    tpu.vector_store %arg9[%c0_81, %150, %c0_82, %c0_83], %153 {strides = array<i32>} : memref<1x4x8x32xf32, #tpu.memory_space<vmem>>, vector<1x1x8x32xf32>,
    %c4_i32 = arith.constant 4 : i32
    %c2_i32_84 = arith.constant 2 : i32
    %154 = arith.muli %c2_i32_84, %arg1 : i32
    %c1_i32_85 = arith.constant 1 : i32
    %155 = arith.subi %c1_i32_85, %154 : i32
    %156 = arith.muli %arg0, %155 : i32
    %157 = arith.addi %arg1, %156 : i32
    %c1_i32_86 = arith.constant 1 : i32
    %158 = arith.cmpi eq, %157, %c1_i32_86 : i32
    %159 = arith.extui %158 : i1 to i32
    %c0_i32_87 = arith.constant 0 : i32
    %160 = arith.cmpi ne, %159, %c0_i32_87 : i32
    scf.if %160 {
      %c0_90 = arith.constant 0 : index
      %c3 = arith.constant 3 : index
      %c0_91 = arith.constant 0 : index
      %c0_92 = arith.constant 0 : index
      %164 = vector.load %arg9[%c0_90, %c3, %c0_91, %c0_92] : memref<1x4x8x32xf32, #tpu.memory_space<vmem>>, vector<1x1x8x32xf32>
      %165 = vector.shape_cast %164 : vector<1x1x8x32xf32> to vector<8x32xf32>
      %c0_93 = arith.constant 0 : index
      %c0_94 = arith.constant 0 : index
      %166 = vector.load %arg16[%c0_93, %c0_94] : memref<8x32xf32, #tpu.memory_space<vmem>>, vector<8x32xf32>
      tpu.vector_store %arg16[%c0_93, %c0_94], %165 {strides = array<i32>} : memref<8x32xf32, #tpu.memory_space<vmem>>, vector<8x32xf32>,
    } else {
    }
    %c1_i32_88 = arith.constant 1 : i32
    %161 = arith.cmpi eq, %arg1, %c1_i32_88 : i32
    %162 = arith.extui %161 : i1 to i32
    %c0_i32_89 = arith.constant 0 : i32
    %163 = arith.cmpi ne, %162, %c0_i32_89 : i32
    scf.if %163 {
      %c0_90 = arith.constant 0 : index
      %c0_91 = arith.constant 0 : index
      %164 = vector.load %arg14[%c0_90, %c0_91] : memref<8x32xf32, #tpu.memory_space<vmem>>, vector<8x32xf32>
      %c0_92 = arith.constant 0 : index
      %c0_93 = arith.constant 0 : index
      %c0_94 = arith.constant 0 : index
      %165 = vector.load %arg10[%c0_92, %c0_93, %c0_94] : memref<1x8x32xf32, #tpu.memory_space<vmem>>, vector<1x8x32xf32>
      %166 = vector.shape_cast %165 : vector<1x8x32xf32> to vector<8x32xf32>
      %167 = vector.shape_cast %164 : vector<8x32xf32> to vector<1x8x32xf32>
      tpu.vector_store %arg10[%c0_92, %c0_93, %c0_94], %167 {strides = array<i32>} : memref<1x8x32xf32, #tpu.memory_space<vmem>>, vector<1x8x32xf32>,
      %c0_95 = arith.constant 0 : index
      %c0_96 = arith.constant 0 : index
      %168 = vector.load %arg15[%c0_95, %c0_96] : memref<8x32xf32, #tpu.memory_space<vmem>>, vector<8x32xf32>
      %c0_97 = arith.constant 0 : index
      %c0_98 = arith.constant 0 : index
      %c0_99 = arith.constant 0 : index
      %169 = vector.load %arg11[%c0_97, %c0_98, %c0_99] : memref<1x8x32xf32, #tpu.memory_space<vmem>>, vector<1x8x32xf32>
      %170 = vector.shape_cast %169 : vector<1x8x32xf32> to vector<8x32xf32>
      %171 = vector.shape_cast %168 : vector<8x32xf32> to vector<1x8x32xf32>
      tpu.vector_store %arg11[%c0_97, %c0_98, %c0_99], %171 {strides = array<i32>} : memref<1x8x32xf32, #tpu.memory_space<vmem>>, vector<1x8x32xf32>,
      %c0_100 = arith.constant 0 : index
      %c0_101 = arith.constant 0 : index
      %172 = vector.load %arg16[%c0_100, %c0_101] : memref<8x32xf32, #tpu.memory_space<vmem>>, vector<8x32xf32>
      %c0_102 = arith.constant 0 : index
      %c0_103 = arith.constant 0 : index
      %c0_104 = arith.constant 0 : index
      %173 = vector.load %arg8[%c0_102, %c0_103, %c0_104] : memref<1x1x32xf32, #tpu.memory_space<vmem>>, vector<1x1x32xf32>
      %174 = vector.shape_cast %173 : vector<1x1x32xf32> to vector<1x32xf32>
      %175 = vector.broadcast %174 : vector<1x32xf32> to vector<8x32xf32>
      %176 = arith.mulf %172, %175 : vector<8x32xf32>
      %cst_105 = arith.constant dense<0.000000e+00> : vector<8xf32>
      %177 = vector.multi_reduction <add>, %176, %cst_105 [1] : vector<8x32xf32> to vector<8xf32>
      %178 = vector.shape_cast %177 : vector<8xf32> to vector<8x1xf32>
      %c0_106 = arith.constant 0 : index
      %c0_107 = arith.constant 0 : index
      %c0_108 = arith.constant 0 : index
      %179 = vector.load %arg12[%c0_106, %c0_107, %c0_108] : memref<1x8x1xf32, #tpu.memory_space<vmem>>, vector<1x8x1xf32>
      %180 = vector.shape_cast %179 : vector<1x8x1xf32> to vector<8x1xf32>
      %181 = vector.shape_cast %178 : vector<8x1xf32> to vector<1x8x1xf32>
      tpu.vector_store %arg12[%c0_106, %c0_107, %c0_108], %181 {strides = array<i32>} : memref<1x8x1xf32, #tpu.memory_space<vmem>>, vector<1x8x1xf32>,
    } else {
    }
    return
  }
  func.func @transform_0(%arg0: i32, %arg1: i32) -> (i32, i32, i32, i32) {
    %c2_i32 = arith.constant 2 : i32
    %0 = arith.muli %c2_i32, %arg1 : i32
    %c1_i32 = arith.constant 1 : i32
    %1 = arith.subi %c1_i32, %0 : i32
    %2 = arith.muli %arg0, %1 : i32
    %3 = arith.addi %arg1, %2 : i32
    %c0_i32 = arith.constant 0 : i32
    %c0_i32_0 = arith.constant 0 : i32
    %c0_i32_1 = arith.constant 0 : i32
    %c0_i32_2 = arith.constant 0 : i32
    return %c0_i32, %3, %c0_i32_0, %c0_i32_1 : i32, i32, i32, i32
  }
  func.func @transform_1(%arg0: i32, %arg1: i32) -> (i32, i32, i32) {
    %c0_i32 = arith.constant 0 : i32
    %c0_i32_0 = arith.constant 0 : i32
    %c0_i32_1 = arith.constant 0 : i32
    return %arg0, %c0_i32, %c0_i32_0 : i32, i32, i32
  }
  func.func @transform_2(%arg0: i32, %arg1: i32) -> (i32, i32, i32) {
    %c0_i32 = arith.constant 0 : i32
    %c0_i32_0 = arith.constant 0 : i32
    %c0_i32_1 = arith.constant 0 : i32
    return %arg0, %c0_i32, %c0_i32_0 : i32, i32, i32
  }
  func.func @transform_3(%arg0: i32, %arg1: i32) -> (i32, i32, i32) {
    %c0_i32 = arith.constant 0 : i32
    %c0_i32_0 = arith.constant 0 : i32
    %c0_i32_1 = arith.constant 0 : i32
    return %arg0, %c0_i32, %c0_i32_0 : i32, i32, i32
  }
  func.func @transform_4(%arg0: i32, %arg1: i32) -> (i32, i32, i32) {
    %c0_i32 = arith.constant 0 : i32
    %c0_i32_0 = arith.constant 0 : i32
    %c0_i32_1 = arith.constant 0 : i32
    return %arg0, %c0_i32, %c0_i32_0 : i32, i32, i32
  }
  func.func @transform_5(%arg0: i32, %arg1: i32) -> (i32, i32, i32) {
    %c0_i32 = arith.constant 0 : i32
    %c0_i32_0 = arith.constant 0 : i32
    %c0_i32_1 = arith.constant 0 : i32
    return %arg0, %c0_i32, %c0_i32_0 : i32, i32, i32
  }
  func.func @transform_6(%arg0: i32, %arg1: i32) -> (i32, i32, i32) {
    %c0_i32 = arith.constant 0 : i32
    %c0_i32_0 = arith.constant 0 : i32
    %c0_i32_1 = arith.constant 0 : i32
    return %arg0, %c0_i32, %c0_i32_0 : i32, i32, i32
  }
  func.func @transform_7(%arg0: i32, %arg1: i32) -> (i32, i32, i32, i32) {
    %c2_i32 = arith.constant 2 : i32
    %0 = arith.muli %c2_i32, %arg1 : i32
    %c1_i32 = arith.constant 1 : i32
    %1 = arith.subi %c1_i32, %0 : i32
    %2 = arith.muli %arg0, %1 : i32
    %3 = arith.addi %arg1, %2 : i32
    %c0_i32 = arith.constant 0 : i32
    %c0_i32_0 = arith.constant 0 : i32
    %c0_i32_1 = arith.constant 0 : i32
    return %arg0, %3, %c0_i32, %c0_i32_0 : i32, i32, i32, i32
  }
  func.func @transform_8(%arg0: i32, %arg1: i32) -> (i32, i32, i32) {
    %c0_i32 = arith.constant 0 : i32
    %c0_i32_0 = arith.constant 0 : i32
    %c0_i32_1 = arith.constant 0 : i32
    return %arg0, %c0_i32, %c0_i32_0 : i32, i32, i32
  }
  func.func @transform_9(%arg0: i32, %arg1: i32) -> (i32, i32, i32) {
    %c0_i32 = arith.constant 0 : i32
    %c0_i32_0 = arith.constant 0 : i32
    %c0_i32_1 = arith.constant 0 : i32
    return %arg0, %c0_i32, %c0_i32_0 : i32, i32, i32
  }
  func.func @transform_10(%arg0: i32, %arg1: i32) -> (i32, i32, i32) {
    %c0_i32 = arith.constant 0 : i32
    %c0_i32_0 = arith.constant 0 : i32
    %c0_i32_1 = arith.constant 0 : i32
    return %arg0, %c0_i32, %c0_i32_0 : i32, i32, i32
  }
}

</mosaic_0001>

<bundles_post_ra>
// kernel: bilstm_forward.2
= control target key start
LH: loop header
LB: loop body
LE: loop exit
PB: predicated region body
PF: predicated region fallthrough
CT: control target
= control target key end

     0   :  { %s1961_s0 = inlined_call_operand.vmem [shape: bf16[1,8,8,32], index: 0, kind: input, shape index: {}]   ;;  %s1962_s1 = inlined_call_operand.vmem [shape: bf16[2,32,128], index: 1, kind: input, shape index: {}]   ;;  %s1963_s2 = inlined_call_operand.vmem [shape: bf16[2,32,128], index: 2, kind: input, shape index: {}]   ;;  %s1964_s3 = inlined_call_operand.vmem [shape: f32[2,1,128], index: 3, kind: input, shape index: {}]   ;;  %s1965_s4 = inlined_call_operand.vmem [shape: f32[2,8,32], index: 4, kind: input, shape index: {}]   ;;  %s1966_s5 = inlined_call_operand.vmem [shape: f32[2,8,32], index: 5, kind: input, shape index: {}]   ;;  %s1967_s6 = inlined_call_operand.vmem [shape: f32[2,1,32], index: 6, kind: input, shape index: {}]   ;;  %s1968_s7 = inlined_call_operand.vmem [shape: f32[2,8,8,32], index: 7, kind: output, shape index: {0}]   ;;  %s1969_s8 = inlined_call_operand.vmem [shape: f32[2,8,32], index: 8, kind: output, shape index: {1}]   ;;  %s1970_s9 = inlined_call_operand.vmem [shape: f32[2,8,32], index: 9, kind: output, shape index: {2}]   ;;  %s1971_s10 = inlined_call_operand.hbm [shape: f32[2,8,1], index: 10, kind: output, shape index: {3}]  }
   0x1   :  { %1988 = sst [smem:[#allocation22_spill]] %s1961_s0 }
   0x2   :  { %1989 = sst [smem:[#allocation23_spill]] %s1962_s1 }
   0x3   :  { %1990 = sst [smem:[#allocation24_spill]] %s1963_s2 }
   0x4   :  { %1991 = sst [smem:[#allocation25_spill]] %s1967_s6 }
   0x5   :  { %1992 = sst [smem:[#allocation26_spill]] %s1971_s10 }
   0x6   :  { %16 = vsyncpa [#allocation7], 0 }
   0x7   :  { %18 = vsyncpa [#allocation7 + $0x1], 0  ;;  %s1672_s13 = smov 0   ;;  %s1674_s14 = smov 0  }
   0x8   :  { %s1676_s15 = smov 0   ;;  %s1678_s16 = smov 0  }
   0x9   :  { %s1680_s17 = smov 0   ;;  %s1682_s18 = smov 0  }
   0xa   :  { %s1684_s19 = smov 0   ;;  %s1686_s20 = smov 0  }
   0xb LB: > { %1993 = sst [smem:[#allocation9_spill]] %s1584_s13  ;;  %s1328_s21 = sadd.s32 4294967295, %s1612_s20   ;;  %s1612_s20 = sphi %s1686_s20, %s24_s20   ;;  %s1608_s19 = sphi %s1684_s19, %s2031_s19   ;;  %s1604_s18 = sphi %s1682_s18, %s2030_s18   ;;  %s1600_s17 = sphi %s1680_s17, %s2029_s17   ;;  %s1596_s16 = sphi %s1678_s16, %s2028_s16   ;;  %s1592_s15 = sphi %s1676_s15, %s2027_s15   ;;  %s1588_s14 = sphi %s1674_s14, %s2026_s14   ;;  %s1584_s13 = sphi %s1672_s13, %s2025_s13  }
   0xc   : > { %1994 = sst [smem:[#allocation10_spill]] %s1588_s14  ;;  %s1329_s22 = sadd.s32 4294967294, %s1612_s20  }
   0xd   : > { %1995 = sst [smem:[#allocation11_spill]] %s1592_s15  ;;  %s33_s23 = sadd.s32 1, %s1604_s18 }
   0xe   : > { %1996 = sst [smem:[#allocation12_spill]] %s1600_s17  ;;  %p34_p0 = scmp.ge.s32.totalorder %s33_s23, 2 }
   0xf   : > { %1997 = sst [smem:[#allocation13_spill]] %s1604_s18  ;;  %s36_s24 = sadd.s32 1, %s1608_s19 }
  0x10   : > { %1998 = sst [smem:[#allocation14_spill]] %s1608_s19  ;;  %p331_p1 = scmp.ne.s32.totalorder %s1592_s15, %s1588_s14 }
  0x11   : > { %1999 = sst [smem:[#allocation15_spill]] %s1612_s20  ;;  %p332_p2 = scmp.eq.s32.totalorder %s1328_s21, 3 }
  0x12   : > { %s2033_s23 = smov (%p34_p0, %s33_s23), 0  ;;  %s2035_s24 = smov (!%p34_p0, %s36_s24), %s1608_s19 }
  0x13   : > { %2000 = sst [smem:[#allocation16_spill]] %s2033_s23  ;;  %p1721_p3 = por %p332_p2, %p331_p1 }
  0x14   : > { %p337_p4 = scmp.ne.s32.totalorder %s1588_s14, %s1584_s13  ;;  %p38_p5 = scmp.ge.s32.totalorder %s2035_s24, 2 }
  0x15   : > { %s2001_s25 = scalar_select %p1721_p3, 1, 0 }
  0x16   : > { %p338_p6 = scmp.eq.s32.totalorder %s1329_s22, 3  ;;  %p1336_p7 = scmp.ge.s32.totalorder %s1612_s20, 1 }
  0x17   : > { %2002 = sst [smem:[#allocation17_spill]] %s2001_s25  ;;  %p415_p8 = scmp.lt.s32.totalorder %s1612_s20, 5 }
  0x18   : > { %s2037_s24 = smov (%p38_p5, %s2035_s24), 0  ;;  %p1731_p9 = por %p338_p6, %p337_p4 }
  0x19   : > { %2003 = sst [smem:[#allocation18_spill]] %s2037_s24  ;;  %p416_p10 = pnand %p1336_p7, %p415_p8 }
  0x1a   : > { %s2004_s26 = scalar_select %p1731_p9, 1, 0 }
  0x1b   : > { %s318_s27 = ssub.s32 %s1608_s19, %s2037_s24  ;;  %s321_s28 = sadd.s32 1, %s1592_s15 }
  0x1c   : > { %2005 = sst [smem:[#allocation19_spill]] %s2004_s26  ;;  %p319_p11 = scmp.eq.s32.totalorder %s318_s27, 0 }
  0x1d   : > { %419 = sbr.rel (%p416_p10) target bundleno = 2610 (0xa32), region = 48 }
  0x1e   : > { %s1739_s29 = scalar_select %p319_p11, %s1592_s15, %s321_s28  }
  0x20   : > { %2006 = sst [smem:[#allocation20_spill]] %s1739_s29 }
  0x22   : > { %s1974_s30 = sand.u32 1, %s1588_s14   ;;  %s1338_s11 = sshll.u32 %s1596_s16, 1 }
  0x23   : > { %s1745_s12 = sshll.u32 %s1974_s30, 3  ;;  %s503_s21 = ssub.s32 1, %s1338_s11 }
  0x24   : > { %s504_s22 = smul.u32 %s1600_s17, %s503_s21  ;;  %p516_p12 = scmp.lt.s32.totalorder %s1600_s17, 1 }
  0x25   : > { %s2008_s1 = sld [smem:[#allocation23_spill]]  ;;  %s501_s19 = scalar_lea.vmem [#allocation6], %s1745_s12 }
  0x26   : > { %s1750_s24 = sadd.s32 %s1596_s16, %s504_s22  ;;  %s2009_s0 = sld [smem:[#allocation22_spill]] }
  0x27   : > { %2007 = sst [smem:[#allocation21_spill]] %s1750_s24  ;;  %s1339_s27 = sshll.u32 %s1750_s24, 2 }
  0x28   : > { %p507_p13 = scmp.lt.s32.totalorder %s1339_s27, 7  ;;  %s2010_s2 = sld [smem:[#allocation24_spill]] }
  0x29   : > { %s1754_s28 = scalar_select %p516_p12, %s1600_s17, 1 }
  0x2a   : > { %s2039_s27 = smov (!%p507_p13, %s1339_s27), 7  ;;  %p1353_p0 = scmp.ne.s32.totalorder %s1596_s16, 0 }
  0x2b   : > { %s1402_s23 = sshll.u32 %s1754_s28, 4  ;;  %s1340_s21 = sshll.u32 %s2039_s27, 2 }
  0x2c   : > { %s520_s29 = scalar_lea.vmem %s2008_s1, %s1402_s23  ;;  %s1767_s13 = scalar_lea.vmem %s2009_s0, %s1340_s21 }
  0x2d   : > { %s1773_s14 = sshll.u32 %s1754_s28, 3  ;;  %570 = sbr.rel (%p1353_p0) target bundleno = 53 (0x35), region = 52 }
  0x2e   : > { %s525_s25 = scalar_lea.vmem %s2010_s2, %s1402_s23  ;;  %s532_s15 = scalar_lea.vmem %s1965_s4, %s1773_s14 }
  0x2f   : > { %s536_s10 = scalar_lea.vmem %s1966_s5, %s1773_s14  ;;  %s550_s20 = sadd.s32 %s1773_s14, %s2039_s27 }
  0x30   : > { %s561_s11 = scalar_lea.vmem %s1969_s8, %s1773_s14  ;;  %s1350_s17 = sshll.u32 %s550_s20, 3 }
  0x31   : > { %s565_s1 = scalar_lea.vmem %s1970_s9, %s1773_s14  ;;  %s1799_s6 = scalar_lea.vmem %s1968_s7, %s1350_s17 }
  0x32   : > { %v571_v0 = vld [vmem:[%s532_s15] sm:$0xff]  ;;  %vm572_vm0 = vcmask 261120  }
  0x33   : > { %v574_v1 = vld [vmem:[%s536_s10] sm:$0xff]  ;;  %573 = vst.msk [vmem:[#allocation3] sm:$0xff] %vm572_vm0, %v571_v0 }
  0x34   : > { %575 = vst.msk [vmem:[#allocation4] sm:$0xff] %vm572_vm0, %v574_v1 }
  0x35 PF: > { %v1405_v2 = vld [vmem:[%s520_s29 + $0x8] sm:$0xff]  ;;  %v1404_v4 = vld [vmem:[%s520_s29] sm:$0xff]  ;;  %s2012_s0 = sld [smem:[#allocation12_spill]]  ;;  %vm614_vm1 = vcmask 261120   ;;  %s1614_s23 = smov 64  }
  0x36   : > { %v1407_v3 = vld [vmem:[%s525_s25 + $0x8] sm:$0xff]  ;;  %627 = vmatpush.bf16.msra.mxu0 %v1405_v2  ;;  %v1406_v5 = vld [vmem:[%s525_s25] sm:$0xff]  ;;  %s1615_s22 = smov 32   ;;  %s1616_s17 = smov 96  }
  0x37   : > { %677 = vmatpush.bf16.msra.mxu1 %v1407_v3  ;;  %754 = vmatpush.bf16.msra.mxu2 %v1407_v3  ;;  %v1408_v7 = vld [vmem:[%s1767_s13] sm:$0xff]  ;;  %v1409_v9 = vld [vmem:[%s1767_s13 + $0x8] sm:$0xff]  ;;  %s2013_s13 = scalar_lea.vmem %s1964_s3, %s1754_s28 }
  0x38   : > { %832 = vmatpush.bf16.msra.mxu3 %v1407_v3  ;;  %v1484_v10 = vld [vmem:[%s2013_s13] ss:$0 sm:$0xff] }
  0x3a   : > { %v654_v6 = vld [vmem:[#allocation3] sm:$0xff]  ;;  %628 = vmatpush.bf16.msra.mxu0 %v1404_v4 }
  0x3b   : > { %v655_v8 = vpack.c.bf16 %v654_v6, %v654_v6  ;;  %678 = vmatpush.bf16.msra.mxu1 %v1406_v5  ;;  %755 = vmatpush.bf16.msra.mxu2 %v1406_v5  ;;  %s1372_s2 = sshll.u32 %s2012_s0, 1  ;;  %s1812_s29 = smul.u32 3, %s2012_s0  ;;  %v705_v24 = vld [vmem:[#allocation4] sm:$0xff] }
  0x3c   : > { %833 = vmatpush.bf16.msra.mxu3 %v1406_v5  ;;  %s1809_s25 = ssub.s32 1, %s1372_s2  ;;  %s1373_s10 = smul.u32 24, %s2012_s0 }
  0x3d   : > { %1370 = vmatmul.msk.bf16.vlgmr.msra.gmra.mxu0 %vm614_vm1, %v1408_v7  ;;  %s1387_s27 = sshll.u32 %s1809_s25, 1  ;;  %s894_s18 = smul.u32 3, %s1809_s25 }
  0x3e   : > { %1382 = vmatmul.msk.bf16.vlgmr.msra.gmra.mxu1 %vm614_vm1, %v655_v8  ;;  %s1817_s30 = sadd.s32 %s1387_s27, %s1812_s29  ;;  %s652_s20 = scalar_lea.vmem [#allocation2], %s1373_s10 }
  0x3f   : > { %910 = vmatpush.bf16.msrb.mxu1 %v1407_v3  ;;  %s1820_s15 = sadd.s32 %s894_s18, %s1812_s29  ;;  %s737_s24 = scalar_lea.vmem %s1799_s6, %s1373_s10 }
  0x40   : > { %s739_s2 = sadd.s32 %s1809_s25, %s1812_s29  ;;  %s1388_s29 = sshll.u32 %s1817_s30, 3 }
  0x41   : > { %s1846_s27 = sshll.u32 %s739_s2, 3  ;;  %s819_s18 = scalar_lea.vmem [#allocation2], %s1388_s29 }
  0x42   : > { %s741_s0 = scalar_lea.vmem [#allocation2], %s1846_s27  ;;  %s814_s25 = scalar_lea.vmem %s1799_s6, %s1846_s27 }
  0x43   : > { %911 = vmatpush.bf16.msrb.mxu1 %v1406_v5  ;;  %s892_s26 = scalar_lea.vmem %s1799_s6, %s1388_s29  ;;  %s1391_s21 = sshll.u32 %s1820_s15, 3 }
  0x44   : > { %s897_s13 = scalar_lea.vmem [#allocation2], %s1391_s21  ;;  %s970_s30 = scalar_lea.vmem %s1799_s6, %s1391_s21 }
  0x45   : > { %s2014_s10 = sld [smem:[#allocation21_spill]] }
  0x4b   : > { %p1395_p1 = scmp.ne.s32.totalorder %s2014_s10, 1 }
  0x4d   : > { %1371 = vmatmul.msk.bf16.gmra.mxu0 %vm614_vm1, %v1409_v9 }
  0xba   : > { %v630_v11 = vpop.f32.mrf.mxu0 }
  0xbb   : > { %v640_v12 = vadd.f32 %v1484_v10, %v630_v11  ;;  %v680_v13 = vpop.f32.mrf.mxu1 }
  0xbd   : > { %644 = vst [vmem:[#allocation2] sm:$0xff] %v640_v12 }
  0xc2   : > { %v632_v14 = vpop.f32.mrf.mxu0 }
  0xc3   : > { %v641_v15 = vadd.f32 %v1484_v10, %v632_v14  ;;  %v682_v16 = vpop.f32.mrf.mxu1 }
  0xc5   : > { %645 = vst [vmem:[#allocation2 + $0x8] sm:$0xff] %v641_v15 }
  0xca   : > { %v635_v17 = vpop.f32.mrf.mxu0 }
  0xcb   : > { %v642_v18 = vadd.f32 %v1484_v10, %v635_v17 }
  0xcd   : > { %646 = vst [vmem:[#allocation2 + $0x10] sm:$0xff] %v642_v18 }
  0xd2   : > { %v637_v19 = vpop.f32.mrf.mxu0 }
  0xd3   : > { %v643_v20 = vadd.f32 %v1484_v10, %v637_v19 }
  0xd5   : > { %647 = vst [vmem:[#allocation2 + $0x18] sm:$0xff] %v643_v20 }
  0xdc   : > { %v653_v21 = vld [vmem:[%s652_s20] sm:$0xff] }
  0xdd   : > { %v684_v22 = vadd.f32 %v680_v13, %v653_v21  ;;  %v742_v52 = vld [vmem:[%s741_s0] sm:$0xff] }
  0xde   : > { %v820_v20 = vld [vmem:[%s819_s18] sm:$0xff] }
  0xdf   : > { %1485 = vtanh.f32 %v684_v22  ;;  %v1383_v25 = vmul.f32 -1.442695, %v684_v22 }
  0xe1   : > { %1487 = vpow2.f32 %v1383_v25 }
  0xe5   : > { %v1486_v23 = vpop.eup %1485 }
  0xe6   : > { %712 = vrot.lane.b32.xlu0 %v1486_v23, %s1614_s23 }
  0xe7   : > { %v1488_v26 = vpop.eup %1487 }
  0xe8   : > { %v688_v27 = vadd.f32 1.0, %v1488_v26 }
  0xea   : > { %1489 = vrcp.f32 %v688_v27  ;;  %v700_v33 = vand.u32 2147483648, %v688_v27  ;;  %vm694_vm3 = vweird.f32 %v688_v27  ;;  %v698_v34 = vand.u32 2147483647, %v688_v27 }
  0xec   : > { %v701_v36 = vor.u32 1.1754944e-38, %v700_v33  ;;  %vm699_vm5 = vcmp.eq.f32.partialorder %v698_v34, 8.507059e+37 }
  0xee   : > { %707 = vrot.lane.b32.xlu0 %v705_v24, %s1615_s22 }
  0xf0   : > { %v1490_v28 = vpop.eup %1489 }
  0xf1   : > { %v690_v29 = vmul.f32 %v1490_v28, %v688_v27  ;;  %vm695_vm2 = vweird.f32 %v1490_v28 }
  0xf2   : > { %vm696_vm4 = vmor %vm694_vm3, %vm695_vm2 }
  0xf3   : > { %v691_v30 = vsub.f32 1.0, %v690_v29 }
  0xf5   : > { %v692_v31 = vmul.f32 %v1490_v28, %v691_v30 }
  0xf7   : > { %v693_v32 = vadd.f32 %v1490_v28, %v692_v31 }
  0xf9   : > { %v697_v35 = vsel %vm696_vm4, %v1490_v28, %v693_v32 }
  0xfa   : > { %v702_v38 = vsel %vm699_vm5, %v701_v36, %v697_v35 }
 0x158   : > { %v713_v37 = vpop.permute.xlu0 %712 }
 0x159   : > { %v715_v39 = vmul.f32 %v713_v37, %v702_v38 }
 0x15b   : > { %717 = vrot.lane.b32.xlu1 %v715_v39, %s1615_s22 }
 0x160   : > { %v708_v40 = vpop.permute.xlu0 %707 }
 0x161   : > { %v710_v41 = vmul.f32 %v708_v40, %v702_v38 }
 0x1cd   : > { %v718_v42 = vpop.permute.xlu1 %717 }
 0x1ce   : > { %v720_v43 = vadd.f32 %v718_v42, %v710_v41 }
 0x1d0   : > { %1491 = vtanh.f32 %v720_v43 }
 0x1d6   : > { %v1492_v44 = vpop.eup %1491 }
 0x1d7   : > { %723 = vrot.lane.b32.xlu1 %v1492_v44, %s1614_s23 }
 0x249   : > { %v724_v45 = vpop.permute.xlu1 %723 }
 0x24a   : > { %v726_v46 = vmul.f32 %v724_v45, %v702_v38 }
 0x24c   : > { %733 = vrot.lane.b32.xlu2 %v726_v46, %s1615_s22 }
 0x254   : > { %728 = vrot.lane.b32.xlu2 %v720_v43, %s1616_s17 }
 0x2a6   : > { %v734_v47 = vpop.permute.xlu2 %733 }
 0x2a7   : > { %736 = vst.msk [vmem:[#allocation3] sm:$0xff] %vm614_vm1, %v734_v47 }
 0x2a8   : > { %738 = vst.msk [vmem:[%s737_s24] sm:$0xff] %vm614_vm1, %v734_v47 }
 0x2ae   : > { %v729_v48 = vpop.permute.xlu2 %728  ;;  %v743_v49 = vld [vmem:[#allocation3] sm:$0xff] }
 0x2af   : > { %731 = vst.msk [vmem:[#allocation4] sm:$0xff] %vm614_vm1, %v729_v48  ;;  %v744_v50 = vpack.c.bf16 %v743_v49, %v743_v49 }
 0x2b1   : > { %1385 = vmatmul.msk.bf16.vlgmr.msra.gmra.mxu2 %vm614_vm1, %v744_v50 }
 0x2b6   : > { %v782_v51 = vld [vmem:[#allocation4] sm:$0xff] }
 0x2b7   : > { %784 = vrot.lane.b32.xlu1 %v782_v51, %s1615_s22 }
 0x329   : > { %v785_v8 = vpop.permute.xlu1 %784 }
 0x334   : > { %v757_v53 = vpop.f32.mrf.mxu2 }
 0x335   : > { %v761_v54 = vadd.f32 %v757_v53, %v742_v52  ;;  %v898_v52 = vld [vmem:[%s897_s13] sm:$0xff] }
 0x337   : > { %1493 = vtanh.f32 %v761_v54  ;;  %v1386_v57 = vmul.f32 -1.442695, %v761_v54 }
 0x339   : > { %1495 = vpow2.f32 %v1386_v57 }
 0x33c   : > { %v759_v55 = vpop.f32.mrf.mxu2 }
 0x33d   : > { %v1494_v56 = vpop.eup %1493 }
 0x33e   : > { %789 = vrot.lane.b32.xlu0 %v1494_v56, %s1614_s23 }
 0x33f   : > { %v1496_v58 = vpop.eup %1495 }
 0x340   : > { %v765_v59 = vadd.f32 1.0, %v1496_v58 }
 0x342   : > { %1497 = vrcp.f32 %v765_v59  ;;  %v777_v1 = vand.u32 2147483648, %v765_v59  ;;  %vm771_vm7 = vweird.f32 %v765_v59  ;;  %v775_v2 = vand.u32 2147483647, %v765_v59 }
 0x344   : > { %v778_v4 = vor.u32 1.1754944e-38, %v777_v1  ;;  %vm776_vm9 = vcmp.eq.f32.partialorder %v775_v2, 8.507059e+37 }
 0x348   : > { %v1498_v60 = vpop.eup %1497 }
 0x349   : > { %v767_v61 = vmul.f32 %v1498_v60, %v765_v59  ;;  %vm772_vm6 = vweird.f32 %v1498_v60 }
 0x34a   : > { %vm773_vm8 = vmor %vm771_vm7, %vm772_vm6 }
 0x34b   : > { %v768_v62 = vsub.f32 1.0, %v767_v61 }
 0x34d   : > { %v769_v63 = vmul.f32 %v1498_v60, %v768_v62 }
 0x34f   : > { %v770_v0 = vadd.f32 %v1498_v60, %v769_v63 }
 0x351   : > { %v774_v3 = vsel %vm773_vm8, %v1498_v60, %v770_v0 }
 0x352   : > { %v779_v6 = vsel %vm776_vm9, %v778_v4, %v774_v3 }
 0x353   : > { %v787_v9 = vmul.f32 %v785_v8, %v779_v6 }
 0x3b0   : > { %v790_v5 = vpop.permute.xlu0 %789 }
 0x3b1   : > { %v792_v7 = vmul.f32 %v790_v5, %v779_v6 }
 0x3b3   : > { %794 = vrot.lane.b32.xlu2 %v792_v7, %s1615_s22 }
 0x40d   : > { %v795_v10 = vpop.permute.xlu2 %794 }
 0x40e   : > { %v797_v11 = vadd.f32 %v795_v10, %v787_v9 }
 0x410   : > { %1499 = vtanh.f32 %v797_v11  ;;  %805 = vrot.lane.b32.xlu2 %v797_v11, %s1616_s17 }
 0x416   : > { %v1500_v12 = vpop.eup %1499 }
 0x417   : > { %800 = vrot.lane.b32.xlu0 %v1500_v12, %s1614_s23 }
 0x46a   : > { %v806_v13 = vpop.permute.xlu2 %805 }
 0x46b   : > { %808 = vst.msk [vmem:[#allocation4] sm:$0xff] %vm614_vm1, %v806_v13 }
 0x472   : > { %v860_v16 = vld [vmem:[#allocation4] sm:$0xff] }
 0x489   : > { %v801_v14 = vpop.permute.xlu0 %800 }
 0x48a   : > { %v803_v15 = vmul.f32 %v801_v14, %v779_v6 }
 0x48c   : > { %810 = vrot.lane.b32.xlu1 %v803_v15, %s1615_s22 }
 0x494   : > { %862 = vrot.lane.b32.xlu1 %v860_v16, %s1615_s22 }
 0x4fe   : > { %v811_v17 = vpop.permute.xlu1 %810 }
 0x4ff   : > { %813 = vst.msk [vmem:[#allocation3] sm:$0xff] %vm614_vm1, %v811_v17 }
 0x500   : > { %815 = vst.msk [vmem:[%s814_s25] sm:$0xff] %vm614_vm1, %v811_v17 }
 0x506   : > { %v821_v18 = vld [vmem:[#allocation3] sm:$0xff]  ;;  %v863_v40 = vpop.permute.xlu1 %862 }
 0x507   : > { %v822_v19 = vpack.c.bf16 %v821_v18, %v821_v18 }
 0x509   : > { %1389 = vmatmul.msk.bf16.vlgmr.msra.gmra.mxu3 %vm614_vm1, %v822_v19 }
 0x58c   : > { %v835_v21 = vpop.f32.mrf.mxu3 }
 0x58d   : > { %v839_v22 = vadd.f32 %v835_v21, %v820_v20 }
 0x58f   : > { %1501 = vtanh.f32 %v839_v22  ;;  %v1390_v25 = vmul.f32 -1.442695, %v839_v22 }
 0x591   : > { %1503 = vpow2.f32 %v1390_v25 }
 0x594   : > { %v837_v23 = vpop.f32.mrf.mxu3 }
 0x595   : > { %v1502_v24 = vpop.eup %1501 }
 0x596   : > { %867 = vrot.lane.b32.xlu0 %v1502_v24, %s1614_s23 }
 0x597   : > { %v1504_v26 = vpop.eup %1503 }
 0x598   : > { %v843_v27 = vadd.f32 1.0, %v1504_v26 }
 0x59a   : > { %1505 = vrcp.f32 %v843_v27  ;;  %v855_v33 = vand.u32 2147483648, %v843_v27  ;;  %vm849_vm11 = vweird.f32 %v843_v27  ;;  %v853_v34 = vand.u32 2147483647, %v843_v27 }
 0x59c   : > { %v856_v36 = vor.u32 1.1754944e-38, %v855_v33  ;;  %vm854_vm13 = vcmp.eq.f32.partialorder %v853_v34, 8.507059e+37 }
 0x5a0   : > { %v1506_v28 = vpop.eup %1505 }
 0x5a1   : > { %v845_v29 = vmul.f32 %v1506_v28, %v843_v27  ;;  %vm850_vm10 = vweird.f32 %v1506_v28 }
 0x5a2   : > { %vm851_vm12 = vmor %vm849_vm11, %vm850_vm10 }
 0x5a3   : > { %v846_v30 = vsub.f32 1.0, %v845_v29 }
 0x5a5   : > { %v847_v31 = vmul.f32 %v1506_v28, %v846_v30 }
 0x5a7   : > { %v848_v32 = vadd.f32 %v1506_v28, %v847_v31 }
 0x5a9   : > { %v852_v35 = vsel %vm851_vm12, %v1506_v28, %v848_v32 }
 0x5aa   : > { %v857_v38 = vsel %vm854_vm13, %v856_v36, %v852_v35 }
 0x5ab   : > { %v865_v41 = vmul.f32 %v863_v40, %v857_v38 }
 0x608   : > { %v868_v37 = vpop.permute.xlu0 %867 }
 0x609   : > { %v870_v39 = vmul.f32 %v868_v37, %v857_v38 }
 0x60b   : > { %872 = vrot.lane.b32.xlu2 %v870_v39, %s1615_s22 }
 0x665   : > { %v873_v42 = vpop.permute.xlu2 %872 }
 0x666   : > { %v875_v43 = vadd.f32 %v873_v42, %v865_v41 }
 0x668   : > { %1507 = vtanh.f32 %v875_v43  ;;  %883 = vrot.lane.b32.xlu2 %v875_v43, %s1616_s17 }
 0x66e   : > { %v1508_v44 = vpop.eup %1507 }
 0x66f   : > { %878 = vrot.lane.b32.xlu0 %v1508_v44, %s1614_s23 }
 0x6c2   : > { %v884_v45 = vpop.permute.xlu2 %883 }
 0x6c3   : > { %886 = vst.msk [vmem:[#allocation4] sm:$0xff] %vm614_vm1, %v884_v45 }
 0x6ca   : > { %v938_v48 = vld [vmem:[#allocation4] sm:$0xff] }
 0x6e1   : > { %v879_v46 = vpop.permute.xlu0 %878 }
 0x6e2   : > { %v881_v47 = vmul.f32 %v879_v46, %v857_v38 }
 0x6e4   : > { %888 = vrot.lane.b32.xlu1 %v881_v47, %s1615_s22 }
 0x6ec   : > { %940 = vrot.lane.b32.xlu1 %v938_v48, %s1615_s22 }
 0x756   : > { %v889_v49 = vpop.permute.xlu1 %888 }
 0x757   : > { %891 = vst.msk [vmem:[#allocation3] sm:$0xff] %vm614_vm1, %v889_v49 }
 0x758   : > { %893 = vst.msk [vmem:[%s892_s26] sm:$0xff] %vm614_vm1, %v889_v49 }
 0x75e   : > { %v899_v50 = vld [vmem:[#allocation3] sm:$0xff]  ;;  %v941_v8 = vpop.permute.xlu1 %940 }
 0x75f   : > { %v900_v51 = vpack.c.bf16 %v899_v50, %v899_v50 }
 0x761   : > { %1392 = vmatmul.msk.bf16.vlgmr.msrb.gmra.mxu1 %vm614_vm1, %v900_v51 }
 0x7de   : > { %v913_v53 = vpop.f32.mrf.mxu1 }
 0x7df   : > { %v917_v54 = vadd.f32 %v913_v53, %v898_v52 }
 0x7e1   : > { %1509 = vtanh.f32 %v917_v54  ;;  %v1393_v57 = vmul.f32 -1.442695, %v917_v54 }
 0x7e3   : > { %1511 = vpow2.f32 %v1393_v57 }
 0x7e6   : > { %v915_v55 = vpop.f32.mrf.mxu1 }
 0x7e7   : > { %v1510_v56 = vpop.eup %1509 }
 0x7e8   : > { %945 = vrot.lane.b32.xlu0 %v1510_v56, %s1614_s23 }
 0x7e9   : > { %v1512_v58 = vpop.eup %1511 }
 0x7ea   : > { %v921_v59 = vadd.f32 1.0, %v1512_v58 }
 0x7ec   : > { %1513 = vrcp.f32 %v921_v59  ;;  %v933_v1 = vand.u32 2147483648, %v921_v59  ;;  %vm927_vm15 = vweird.f32 %v921_v59  ;;  %v931_v2 = vand.u32 2147483647, %v921_v59 }
 0x7ee   : > { %v934_v4 = vor.u32 1.1754944e-38, %v933_v1  ;;  %vm932_vm2 = vcmp.eq.f32.partialorder %v931_v2, 8.507059e+37 }
 0x7f2   : > { %v1514_v60 = vpop.eup %1513 }
 0x7f3   : > { %v923_v61 = vmul.f32 %v1514_v60, %v921_v59  ;;  %vm928_vm14 = vweird.f32 %v1514_v60 }
 0x7f4   : > { %vm929_vm0 = vmor %vm927_vm15, %vm928_vm14 }
 0x7f5   : > { %v924_v62 = vsub.f32 1.0, %v923_v61 }
 0x7f7   : > { %v925_v63 = vmul.f32 %v1514_v60, %v924_v62 }
 0x7f9   : > { %v926_v0 = vadd.f32 %v1514_v60, %v925_v63 }
 0x7fb   : > { %v930_v3 = vsel %vm929_vm0, %v1514_v60, %v926_v0 }
 0x7fc   : > { %v935_v6 = vsel %vm932_vm2, %v934_v4, %v930_v3 }
 0x7fd   : > { %v943_v9 = vmul.f32 %v941_v8, %v935_v6 }
 0x85a   : > { %v946_v5 = vpop.permute.xlu0 %945 }
 0x85b   : > { %v948_v7 = vmul.f32 %v946_v5, %v935_v6 }
 0x85d   : > { %950 = vrot.lane.b32.xlu2 %v948_v7, %s1615_s22 }
 0x8b7   : > { %v951_v10 = vpop.permute.xlu2 %950 }
 0x8b8   : > { %v953_v11 = vadd.f32 %v951_v10, %v943_v9 }
 0x8ba   : > { %1515 = vtanh.f32 %v953_v11  ;;  %961 = vrot.lane.b32.xlu1 %v953_v11, %s1616_s17 }
 0x8c0   : > { %v1516_v12 = vpop.eup %1515 }
 0x8c1   : > { %956 = vrot.lane.b32.xlu0 %v1516_v12, %s1614_s23 }
 0x92c   : > { %v962_v13 = vpop.permute.xlu1 %961 }
 0x92d   : > { %964 = vst.msk [vmem:[#allocation4] sm:$0xff] %vm614_vm1, %v962_v13 }
 0x933   : > { %v957_v14 = vpop.permute.xlu0 %956 }
 0x934   : > { %v959_v15 = vmul.f32 %v957_v14, %v935_v6 }
 0x936   : > { %966 = vrot.lane.b32.xlu2 %v959_v15, %s1615_s22 }
 0x98e   : > { %979 = sbr.rel (%p1395_p1) target bundleno = 2459 (0x99b), region = 56 }
 0x990   : > { %v967_v16 = vpop.permute.xlu2 %966 }
 0x991   : > { %969 = vst.msk [vmem:[#allocation3] sm:$0xff] %vm614_vm1, %v967_v16 }
 0x992   : > { %971 = vst.msk [vmem:[%s970_s30] sm:$0xff] %vm614_vm1, %v967_v16 }
 0x999   : > { %v1396_v17 = vld [vmem:[%s1799_s6 + $0x18] sm:$0xff] }
 0x99a   : > { %982 = vst.msk [vmem:[#allocation5] sm:$0xff] %vm614_vm1, %v1396_v17 }
 0x99b PF: > { %p1397_p2 = scmp.ne.s32.totalorder %s1596_s16, 1 }
 0x99c   : > { %s2015_s22 = sld [smem:[#allocation25_spill]] (!%p1397_p2) }
 0x99d   : > { %986 = sbr.rel (%p1397_p2) target bundleno = 2588 (0xa1c), region = 60 }
 0x9a2   : > { %v987_v18 = vld [vmem:[#allocation3] sm:$0xff]  ;;  %v989_v19 = vld [vmem:[#allocation4] sm:$0xff]  ;;  %v991_v20 = vld [vmem:[#allocation5] sm:$0xff]  ;;  %s2016_s17 = scalar_lea.vmem %s2015_s22, %s1754_s28  ;;  %vm1000_vm3 = vcmask 7168  }
 0x9a3   : > { %988 = vst.msk [vmem:[%s561_s11] sm:$0xff] %vm614_vm1, %v987_v18  ;;  %v1517_v21 = vld [vmem:[%s2016_s17] ss:$0 sm:$0xff] }
 0x9a4   : > { %990 = vst.msk [vmem:[%s565_s1] sm:$0xff] %vm614_vm1, %v989_v19  ;;  %v996_v22 = vmul.f32 %v1517_v21, %v991_v20 }
 0x9a6   : > { %v997_v23 = vsel %vm614_vm1, %v996_v22, 0.0 }
 0x9a7   : > { %998 = vadd.xlane.f32.xlu0 %v997_v23 }
 0xa1a   : > { %v999_v24 = vpop.xlane.xlu0 %998 }
 0xa1b   : > { %1001 = vst.msk [vmem:[%s501_s19] sm:$0xff] %vm1000_vm3, %v999_v24 }
 0xa1c PF: > { %s2017_s11 = sld [smem:[#allocation12_spill]]  ;;  %s1050_s1 = sshll.u32 %s501_s19, 4  ;;  %s1051_s1 = int_to_ptr.vmem [resolvable:$true] %s1050_s1 }
 0xa1d   : > { %s2018_s2 = sld [smem:[#allocation10_spill]] }
 0xa1e   : > { %s2020_s29 = sld [smem:[#allocation26_spill]] }
 0xa22   : > { %s1399_s27 = sshll.u32 %s2017_s11, 3 }
 0xa23   : > { %s2021_s26 = sand.u32 1, %s2018_s2  }
 0xa24   : > { %s1048_s18 = scalar_lea.hbm %s2020_s29, %s1399_s27  ;;  %s1024_s21 = scalar_lea.sflag [#allocation7], %s2021_s26 }
 0xa25   : > { %s1052_s14 = sshll.u32 %s1048_s18, 4  ;;  %s1538_s20 = scalar_lea.hbm %s2020_s29, 16  ;;  %s1053_s14 = int_to_ptr.hbm [resolvable:$true] %s1052_s14 }
 0xa26   : > { %s1532_s13 = sshra.s32 %s1053_s14, 4  ;;  %s1533_s13 = int_to_ptr.hbm [resolvable:$true] %s1532_s13 }
 0xa27   : > { %s1534_s30 = scalar_lea.hbm %s1533_s13, 8  ;;  %p1539_p7 = scmp.lt.s32.totalorder %s1533_s13, %s2020_s29 }
 0xa28   : > { %p1535_p4 = scmp.ne.s32.totalorder %s1533_s13, %s1534_s30  ;;  %p1540_p8 = scmp.lt.s32.totalorder %s1538_s20, %s1534_s30 }
 0xa2a   : > { %p1536_p5 = pnand %p1535_p4, %p1721_p3  ;;  %p1541_p10 = por %p1540_p8, %p1539_p7 }
 0xa2c   : > { %p1537_p6 = pneg %p1536_p5 }
 0xa2e   : > { %p1542_p11 = pnand %p1541_p10, %p1537_p6 }
 0xa30   : > { %1545 = shalt.err (!%p1542_p11)
}
 0xa31   : > { %1410 = dma.vmem_to_hbm [thread:$0]  (%p1721_p3), %s1051_s1, 128, %s1053_s14, %s1024_s21  }
 0xa32 PF: > { %s2022_s12 = sld [smem:[#allocation15_spill]] }
 0xa33   : > { %s2023_s19 = sld [smem:[#allocation9_spill]] }
 0xa38   : > { %p1416_p12 = scmp.ge.s32.totalorder %s2022_s12, 2 }
 0xa39   : > { %s1094_s17 = sand.u32 1, %s2023_s19  }
 0xa3a   : > { %p1413_p13 = pnand %p1416_p12, %p1731_p9  ;;  %s1095_s16 = scalar_lea.sflag [#allocation7], %s1094_s17 }
 0xa3c   : > { %p1414_p0 = pneg %p1413_p13 }
 0xa3e   : > { %1579 = dma.done.wait (%p1414_p0), %s1095_s16, 128  }
 0xa3f   : > { %1581 = vsyncadd (%p1414_p0), %s1095_s16, 4294967168  ;;  %s24_s20 = sadd.s32 1, %s2022_s12   ;;  %s2025_s13 = sld [smem:[#allocation10_spill]] }
 0xa40   : > { %p21_p1 = scmp.ge.s32.totalorder %s24_s20, 6   ;;  %s2026_s14 = sld [smem:[#allocation11_spill]] }
 0xa41   : > { %s2027_s15 = sld [smem:[#allocation20_spill]] }
 0xa42   : > { %s2028_s16 = sld [smem:[#allocation13_spill]]  ;;  %23 = sbr.rel (!%p21_p1) target bundleno = 11 (0xb), region = 158 }
 0xa43   : > { %s2029_s17 = sld [smem:[#allocation14_spill]] }
 0xa44   : > { %s2030_s18 = sld [smem:[#allocation16_spill]] }
 0xa45   : > { %s2031_s19 = sld [smem:[#allocation18_spill]] }
 0xa47   :  { %1101 = vsyncpa [#allocation7], 1 }
 0xa48   :  { %1103 = vsyncpa [#allocation7 + $0x1], 1 }

// kernel: bilstm_forward.3
= control target key start
LH: loop header
LB: loop body
LE: loop exit
PB: predicated region body
PF: predicated region fallthrough
CT: control target
= control target key end

     0   :  { %s2148_s0 = inlined_call_operand.vmem [shape: f32[2,8,8,32], index: 0, kind: input, shape index: {}]   ;;  %s2149_s1 = inlined_call_operand.vmem [shape: bf16[2,64,128], index: 1, kind: input, shape index: {}]   ;;  %s2150_s2 = inlined_call_operand.vmem [shape: bf16[2,32,128], index: 2, kind: input, shape index: {}]   ;;  %s2151_s3 = inlined_call_operand.vmem [shape: f32[2,1,128], index: 3, kind: input, shape index: {}]   ;;  %s2152_s4 = inlined_call_operand.vmem [shape: f32[2,8,32], index: 4, kind: input, shape index: {}]   ;;  %s2153_s5 = inlined_call_operand.vmem [shape: f32[2,8,32], index: 5, kind: input, shape index: {}]   ;;  %s2154_s6 = inlined_call_operand.vmem [shape: f32[2,1,32], index: 6, kind: input, shape index: {}]   ;;  %s2155_s7 = inlined_call_operand.hbm [shape: f32[2,8,8,32], index: 7, kind: output, shape index: {0}]   ;;  %s2156_s8 = inlined_call_operand.vmem [shape: f32[2,8,32], index: 8, kind: output, shape index: {1}]   ;;  %s2157_s9 = inlined_call_operand.vmem [shape: f32[2,8,32], index: 9, kind: output, shape index: {2}]   ;;  %s2158_s10 = inlined_call_operand.vmem [shape: f32[2,8,1], index: 10, kind: output, shape index: {3}]  }
   0x1   :  { %2174 = sst [smem:[#allocation23_spill]] %s2148_s0 }
   0x2   :  { %2175 = sst [smem:[#allocation24_spill]] %s2149_s1 }
   0x3   :  { %2176 = sst [smem:[#allocation25_spill]] %s2150_s2 }
   0x4   :  { %2177 = sst [smem:[#allocation26_spill]] %s2152_s4 }
   0x5   :  { %2178 = sst [smem:[#allocation27_spill]] %s2155_s7 }
   0x6   :  { %2179 = sst [smem:[#allocation28_spill]] %s2157_s9 }
   0x7   :  { %2180 = sst [smem:[#allocation29_spill]] %s2158_s10 }
   0x8   :  { %16 = vsyncpa [#allocation8], 0 }
   0x9   :  { %18 = vsyncpa [#allocation8 + $0x1], 0  ;;  %s1807_s13 = smov 0   ;;  %s1809_s14 = smov 0  }
   0xa   :  { %s1811_s15 = smov 0   ;;  %s1813_s16 = smov 0  }
   0xb   :  { %s1815_s17 = smov 0   ;;  %s1817_s18 = smov 0  }
   0xc   :  { %s1819_s19 = smov 0   ;;  %s1821_s20 = smov 0  }
   0xd   :  { %s1823_s21 = smov 0   ;;  %s1825_s22 = smov 0  }
   0xe LB: > { %2181 = sst [smem:[#allocation10_spill]] %s1709_s13  ;;  %s1418_s23 = sadd.s32 4294967295, %s1745_s22   ;;  %s1745_s22 = sphi %s1825_s22, %s24_s22   ;;  %s1741_s21 = sphi %s1823_s21, %s2223_s21   ;;  %s1737_s20 = sphi %s1821_s20, %s2222_s20   ;;  %s1733_s19 = sphi %s1819_s19, %s2221_s19   ;;  %s1729_s18 = sphi %s1817_s18, %s2220_s18   ;;  %s1725_s17 = sphi %s1815_s17, %s2219_s17   ;;  %s1721_s16 = sphi %s1813_s16, %s2218_s16   ;;  %s1717_s15 = sphi %s1811_s15, %s2217_s15   ;;  %s1713_s14 = sphi %s1809_s14, %s2225_s14   ;;  %s1709_s13 = sphi %s1807_s13, %s2224_s13  }
   0xf   : > { %2182 = sst [smem:[#allocation11_spill]] %s1717_s15  ;;  %s33_s25 = sadd.s32 1, %s1737_s20 }
  0x10   : > { %2183 = sst [smem:[#allocation12_spill]] %s1725_s17  ;;  %s36_s26 = sadd.s32 1, %s1741_s21 }
  0x11   : > { %2184 = sst [smem:[#allocation13_spill]] %s1729_s18  ;;  %p34_p0 = scmp.ge.s32.totalorder %s33_s25, 2 }
  0x12   : > { %2185 = sst [smem:[#allocation14_spill]] %s1737_s20  ;;  %s1420_s27 = sshll.u32 %s1737_s20, 1 }
  0x13   : > { %2186 = sst [smem:[#allocation15_spill]] %s1741_s21  ;;  %s41_s28 = ssub.s32 1, %s1420_s27 }
  0x14   : > { %2187 = sst [smem:[#allocation16_spill]] %s1745_s22  ;;  %s51_s29 = sadd.s32 1, %s1725_s17 }
  0x15   : > { %s2227_s25 = smov (%p34_p0, %s33_s25), 0  ;;  %s2229_s26 = smov (!%p34_p0, %s36_s26), %s1741_s21 }
  0x16   : > { %2188 = sst [smem:[#allocation17_spill]] %s2227_s25  ;;  %s42_s30 = smul.u32 %s1741_s21, %s41_s28 }
  0x17   : > { %s1421_s11 = sshll.u32 %s2227_s25, 1  ;;  %p38_p1 = scmp.ge.s32.totalorder %s2229_s26, 2 }
  0x18   : > { %s45_s12 = ssub.s32 1, %s1421_s11  ;;  %s43_s24 = sadd.s32 %s1737_s20, %s42_s30 }
  0x19   : > { %p58_p2 = scmp.ne.s32.totalorder %s1725_s17, %s1721_s16  ;;  %s2231_s26 = smov (%p38_p1, %s2229_s26), 0 }
  0x1a   : > { %2189 = sst [smem:[#allocation18_spill]] %s2231_s26  ;;  %p59_p3 = scmp.eq.s32.totalorder %s1745_s22, 0 }
  0x1b   : > { %s243_s27 = sadd.s32 1, %s1717_s15  ;;  %s46_s7 = smul.u32 %s45_s12, %s2231_s26 }
  0x1c   : > { %s238_s18 = ssub.s32 %s1741_s21, %s2231_s26  ;;  %p1878_p4 = por %p59_p3, %p58_p2 }
  0x1d   : > { %p253_p5 = scmp.ne.s32.totalorder %s1717_s15, %s1713_s14  ;;  %s47_s10 = sadd.s32 %s46_s7, %s2227_s25 }
  0x1e   : > { %p254_p6 = scmp.eq.s32.totalorder %s1418_s23, 3  ;;  %s48_s30 = ssub.s32 %s43_s24, %s47_s10 }
  0x1f   : > { %p259_p7 = scmp.ne.s32.totalorder %s1713_s14, %s1709_s13  ;;  %p49_p8 = scmp.eq.s32.totalorder %s48_s30, 0 }
  0x20   : > { %s240_s11 = sor.u32 %s238_s18, %s48_s30  ;;  %p1887_p10 = por %p254_p6, %p253_p5 }
  0x21   : > { %p241_p9 = scmp.eq.s32.totalorder %s240_s11, 0  ;;  %s2195_s26 = sadd.s32 4294967294, %s1745_s22  }
  0x22   : > { %s2191_s20 = scalar_select %p1887_p10, 1, 0 }
  0x23   : > { %s1892_s9 = scalar_select %p49_p8, %s1725_s17, %s51_s29  }
  0x24   : > { %2192 = sst [smem:[#allocation19_spill]] %s2191_s20  ;;  %p260_p11 = scmp.eq.s32.totalorder %s2195_s26, 3 }
  0x25   : > { %2193 = sst [smem:[#allocation20_spill]] %s1892_s9  ;;  %p1425_p13 = scmp.ge.s32.totalorder %s1745_s22, 4 }
  0x26   : > { %s1895_s12 = scalar_select %p241_p9, %s1717_s15, %s243_s27  }
  0x27   : > { %p1899_p12 = por %p260_p11, %p259_p7  ;;  %396 = sbr.rel (%p1425_p13) target bundleno = 62 (0x3e), region = 40 }
  0x28   : > { %2194 = sst [smem:[#allocation21_spill]] %s1895_s12 }
  0x29   : > { %s2196_s21 = scalar_select %p1899_p12, 1, 0 }
  0x2b   : > { %2197 = sst [smem:[#allocation22_spill]] %s2196_s21 }
  0x2c   : > { %399 = sbr.rel (!%p1878_p4) target bundleno = 62 (0x3e), region = 44  ;;  %s401_s7 = sand.u32 (%p1878_p4), 1, %s1725_s17  }
  0x2d   : > { %s1500_s10 = sshll.u32 (%p1878_p4), %s43_s24, 5  ;;  %s1426_s18 = sshll.u32 (%p1878_p4), %s401_s7, 6 }
  0x2e   : > { %s2198_s0 = sld [smem:[#allocation23_spill]] (%p1878_p4)  ;;  %s403_s26 = scalar_lea.vmem (%p1878_p4), [#allocation6], %s1426_s18 }
  0x34   : > { %s410_s27 = scalar_lea.vmem %s2198_s0, %s1500_s10 }
  0x35   : > { %v453_v0 = vld [vmem:[%s410_s27] sm:$0xff]  ;;  %v455_v1 = vld [vmem:[%s410_s27 + $0x8] sm:$0xff]  ;;  %v457_v2 = vld [vmem:[%s410_s27 + $0x10] sm:$0xff] }
  0x36   : > { %454 = vst [vmem:[%s403_s26] sm:$0xff] %v453_v0  ;;  %v459_v3 = vld [vmem:[%s410_s27 + $0x18] sm:$0xff]  ;;  %v461_v4 = vld [vmem:[%s410_s27 + $0x40] sm:$0xff]  ;;  %v463_v5 = vld [vmem:[%s410_s27 + $0x48] sm:$0xff] }
  0x37   : > { %456 = vst [vmem:[%s403_s26 + $0x8] sm:$0xff] %v455_v1  ;;  %v465_v6 = vld [vmem:[%s410_s27 + $0x50] sm:$0xff]  ;;  %v467_v7 = vld [vmem:[%s410_s27 + $0x58] sm:$0xff] }
  0x38   : > { %458 = vst [vmem:[%s403_s26 + $0x10] sm:$0xff] %v457_v2 }
  0x39   : > { %460 = vst [vmem:[%s403_s26 + $0x18] sm:$0xff] %v459_v3 }
  0x3a   : > { %462 = vst [vmem:[%s403_s26 + $0x20] sm:$0xff] %v461_v4 }
  0x3b   : > { %464 = vst [vmem:[%s403_s26 + $0x28] sm:$0xff] %v463_v5 }
  0x3c   : > { %466 = vst [vmem:[%s403_s26 + $0x30] sm:$0xff] %v465_v6 }
  0x3d   : > { %468 = vst [vmem:[%s403_s26 + $0x38] sm:$0xff] %v467_v7 }
  0x3e PF: > { %p1430_p0 = scmp.ge.s32.totalorder %s1745_s22, 1  ;;  %p473_p1 = scmp.lt.s32.totalorder %s1745_s22, 5 }
  0x40   : > { %p474_p2 = pnand %p1430_p0, %p473_p1 }
  0x41   : > { %s480_s24 = sand.u32 (!%p474_p2), 1, %s1721_s16   ;;  %s2164_s28 = sand.u32 (!%p474_p2), 1, %s1713_s14  }
  0x42   : > { %477 = sbr.rel (%p474_p2) target bundleno = 2666 (0xa6a), region = 82  ;;  %s1431_s30 = sshll.u32 (!%p474_p2), %s480_s24, 6 }
  0x43   : > { %s1432_s11 = sshll.u32 (!%p474_p2), %s2164_s28, 5  ;;  %p558_p3 = scmp.lt.s32.totalorder (!%p474_p2), %s1733_s19, 1 }
  0x44   : > { %s2199_s1 = sld [smem:[#allocation24_spill]] (!%p474_p2)  ;;  %s1961_s20 = scalar_lea.vmem (!%p474_p2), [#allocation6], %s1431_s30 }
  0x45   : > { %s2200_s2 = sld [smem:[#allocation25_spill]] (!%p474_p2)  ;;  %s1963_s23 = scalar_lea.vmem (!%p474_p2), [#allocation7], %s1432_s11 }
  0x46   : > { %s2201_s4 = sld [smem:[#allocation26_spill]] (!%p474_p2) }
  0x47   : > { %s1918_s7 = scalar_select %p558_p3, %s1733_s19, 1 }
  0x48   : > { %s2202_s17 = sld [smem:[#allocation28_spill]] }
  0x49   : > { %s1501_s10 = sshll.u32 %s1918_s7, 5  ;;  %s1502_s18 = sshll.u32 %s1918_s7, 4 }
  0x4a   : > { %s562_s27 = scalar_lea.vmem %s2199_s1, %s1501_s10  ;;  %s1935_s9 = sshll.u32 %s1918_s7, 3 }
  0x4b   : > { %s1928_s24 = scalar_lea.vmem %s2200_s2, %s1502_s18  ;;  %s578_s18 = scalar_lea.vmem %s2153_s5, %s1935_s9 }
  0x4c   : > { %s574_s10 = scalar_lea.vmem %s2201_s4, %s1935_s9  ;;  %s581_s0 = scalar_lea.vmem %s2154_s6, %s1918_s7 }
  0x4d   : > { %s590_s1 = scalar_lea.vmem %s2156_s8, %s1935_s9  ;;  %s2203_s22 = sld [smem:[#allocation29_spill]] }
  0x4e   : > { %s594_s12 = scalar_lea.vmem %s2202_s17, %s1935_s9  ;;  %s2204_s29 = sld [smem:[#allocation13_spill]] }
  0x53   : > { %s598_s4 = scalar_lea.vmem %s2203_s22, %s1935_s9 }
  0x54   : > { %p1442_p4 = scmp.ne.s32.totalorder %s2204_s29, 0 }
  0x56   : > { %603 = sbr.rel (%p1442_p4) target bundleno = 94 (0x5e), region = 90 }
  0x5b   : > { %v604_v8 = vld [vmem:[%s574_s10] sm:$0xff]  ;;  %vm605_vm0 = vcmask 261120  }
  0x5c   : > { %v607_v9 = vld [vmem:[%s578_s18] sm:$0xff]  ;;  %606 = vst.msk [vmem:[#allocation3] sm:$0xff] %vm605_vm0, %v604_v8 }
  0x5d   : > { %608 = vst.msk [vmem:[#allocation4] sm:$0xff] %vm605_vm0, %v607_v9 }
  0x5e PF: > { %v1504_v10 = vld [vmem:[%s562_s27 + $0x8] sm:$0xff]  ;;  %v1506_v11 = vld [vmem:[%s562_s27 + $0x18] sm:$0xff]  ;;  %v1503_v12 = vld [vmem:[%s562_s27] sm:$0xff]  ;;  %vm655_vm1 = vcmask 261120   ;;  %s1467_s2 = sshll.u32 %s1733_s19, 1  ;;  %s1985_s15 = smul.u32 3, %s1733_s19 }
  0x5f   : > { %v1505_v13 = vld [vmem:[%s562_s27 + $0x10] sm:$0xff]  ;;  %v625_v14 = vld [vmem:[%s1961_s20] sm:$0xff]  ;;  %v626_v15 = vld [vmem:[%s1961_s20 + $0x8] sm:$0xff]  ;;  %668 = vmatpush.bf16.msra.mxu0 %v1504_v10  ;;  %728 = vmatpush.bf16.msra.mxu1 %v1506_v11  ;;  %s1982_s13 = ssub.s32 1, %s1467_s2  ;;  %s2205_s27 = scalar_lea.vmem %s2151_s3, %s1918_s7 }
  0x60   : > { %v629_v16 = vpack.c.bf16 %v625_v14, %v625_v14  ;;  %v630_v17 = vpack.c.bf16 %v626_v15, %v626_v15  ;;  %v1453_v18 = vld [vmem:[%s1961_s20 + $0x20] sm:$0xff]  ;;  %v1454_v19 = vld [vmem:[%s1961_s20 + $0x28] sm:$0xff]  ;;  %v1508_v20 = vld [vmem:[%s1928_s24 + $0x8] sm:$0xff]  ;;  %s995_s21 = smul.u32 3, %s1982_s13  ;;  %s1747_s18 = smov 64  }
  0x61   : > { %v690_v21 = vpack.c.bf16 %v1453_v18, %v1453_v18  ;;  %v691_v22 = vpack.c.bf16 %v1454_v19, %v1454_v19  ;;  %778 = vmatpush.bf16.msra.mxu2 %v1508_v20  ;;  %v1507_v25 = vld [vmem:[%s1928_s24] sm:$0xff]  ;;  %855 = vmatpush.bf16.msra.mxu3 %v1508_v20  ;;  %v627_v32 = vld [vmem:[%s1961_s20 + $0x10] sm:$0xff]  ;;  %v628_v33 = vld [vmem:[%s1961_s20 + $0x18] sm:$0xff]  ;;  %s1468_s24 = smul.u32 24, %s1733_s19  ;;  %s1748_s26 = smov 32  }
  0x62   : > { %v637_v23 = vunpack.c.l.b16 %v629_v16  ;;  %v638_v24 = vunpack.c.l.b16 %v630_v17  ;;  %v1455_v34 = vld [vmem:[%s1961_s20 + $0x30] sm:$0xff]  ;;  %v1456_v35 = vld [vmem:[%s1961_s20 + $0x38] sm:$0xff]  ;;  %v631_v36 = vpack.c.bf16 %v627_v32, %v627_v32  ;;  %v632_v37 = vpack.c.bf16 %v628_v33, %v628_v33  ;;  %s1482_s20 = sshll.u32 %s1982_s13, 1  ;;  %s1993_s25 = sadd.s32 %s995_s21, %s1985_s15  ;;  %v1601_v46 = vld [vmem:[%s2205_s27] ss:$0 sm:$0xff] }
  0x63   : > { %v755_v26 = vld [vmem:[#allocation3] sm:$0xff]  ;;  %v698_v27 = vunpack.c.l.b16 %v690_v21  ;;  %v699_v28 = vunpack.c.l.b16 %v691_v22  ;;  %669 = vmatpush.bf16.msra.mxu0 %v1503_v12  ;;  %729 = vmatpush.bf16.msra.mxu1 %v1505_v13  ;;  %v692_v38 = vpack.c.bf16 %v1455_v34, %v1455_v34  ;;  %v693_v39 = vpack.c.bf16 %v1456_v35, %v1456_v35  ;;  %s1990_s22 = sadd.s32 %s1482_s20, %s1985_s15  ;;  %s753_s10 = scalar_lea.vmem [#allocation2], %s1468_s24 }
  0x64   : > { %v641_v29 = vpack.c.b16 %v638_v24, %v637_v23  ;;  %v756_v31 = vpack.c.bf16 %v755_v26, %v755_v26  ;;  %v639_v40 = vunpack.c.l.b16 %v631_v36  ;;  %v640_v41 = vunpack.c.l.b16 %v632_v37  ;;  %v806_v4 = vld [vmem:[#allocation4] sm:$0xff]  ;;  %s1749_s16 = smov 96   ;;  %s838_s28 = scalar_lea.vmem %s1963_s23, %s1468_s24 [#allocation7] }
  0x65   : > { %v702_v30 = vpack.c.b16 %v699_v28, %v698_v27  ;;  %779 = vmatpush.bf16.msra.mxu2 %v1507_v25  ;;  %856 = vmatpush.bf16.msra.mxu3 %v1507_v25  ;;  %v700_v42 = vunpack.c.l.b16 %v692_v38  ;;  %v701_v43 = vunpack.c.l.b16 %v693_v39  ;;  %s840_s17 = sadd.s32 %s1982_s13, %s1985_s15  ;;  %s1483_s15 = sshll.u32 %s1990_s22, 3 }
  0x66   : > { %1451 = vmatmul.msk.bf16.vlgmr.msra.gmra.mxu0 %vm655_vm1, %v641_v29  ;;  %v642_v44 = vpack.c.b16 %v640_v41, %v639_v40  ;;  %s2019_s29 = sshll.u32 %s840_s17, 3  ;;  %s920_s20 = scalar_lea.vmem [#allocation2], %s1483_s15 }
  0x67   : > { %1465 = vmatmul.msk.bf16.vlgmr.msra.gmra.mxu1 %vm655_vm1, %v702_v30  ;;  %v703_v45 = vpack.c.b16 %v701_v43, %v700_v42  ;;  %s842_s2 = scalar_lea.vmem [#allocation2], %s2019_s29  ;;  %s915_s13 = scalar_lea.vmem %s1963_s23, %s2019_s29 [#allocation7] }
  0x68   : > { %1477 = vmatmul.msk.bf16.vlgmr.msra.gmra.mxu2 %vm655_vm1, %v756_v31  ;;  %s993_s21 = scalar_lea.vmem %s1963_s23, %s1483_s15 [#allocation7]  ;;  %s1486_s30 = sshll.u32 %s1993_s25, 3 }
  0x69   : > { %933 = vmatpush.bf16.msrb.mxu2 %v1508_v20  ;;  %1011 = vmatpush.bf16.msrb.mxu3 %v1508_v20  ;;  %s998_s11 = scalar_lea.vmem [#allocation2], %s1486_s30  ;;  %s2206_s22 = sld [smem:[#allocation13_spill]] }
  0x6a   : > { %s1071_s17 = scalar_lea.vmem %s1963_s23, %s1486_s30 [#allocation7] }
  0x6d   : > { %934 = vmatpush.bf16.msrb.mxu2 %v1507_v25  ;;  %1012 = vmatpush.bf16.msrb.mxu3 %v1507_v25 }
  0x6f   : > { %s1489_s27 = sshll.u32 %s2206_s22, 1 }
  0x70   : > { %s1074_s24 = ssub.s32 1, %s1489_s27 }
  0x76   : > { %1452 = vmatmul.msk.bf16.gmra.mxu0 %vm655_vm1, %v642_v44 }
  0x77   : > { %1466 = vmatmul.msk.bf16.gmra.mxu1 %vm655_vm1, %v703_v45 }
  0xe3   : > { %v671_v47 = vpop.f32.mrf.mxu0 }
  0xe4   : > { %v731_v48 = vpop.f32.mrf.mxu1  ;;  %v681_v49 = vadd.f32 %v1601_v46, %v671_v47 }
  0xe6   : > { %v741_v50 = vadd.f32 %v731_v48, %v681_v49 }
  0xe8   : > { %745 = vst [vmem:[#allocation2] sm:$0xff] %v741_v50 }
  0xeb   : > { %v673_v51 = vpop.f32.mrf.mxu0  ;;  %v781_v54 = vpop.f32.mrf.mxu2 }
  0xec   : > { %v733_v52 = vpop.f32.mrf.mxu1  ;;  %v682_v53 = vadd.f32 %v1601_v46, %v673_v51 }
  0xee   : > { %v742_v55 = vadd.f32 %v733_v52, %v682_v53 }
  0xf0   : > { %746 = vst [vmem:[#allocation2 + $0x8] sm:$0xff] %v742_v55 }
  0xf3   : > { %v676_v56 = vpop.f32.mrf.mxu0  ;;  %v783_v59 = vpop.f32.mrf.mxu2 }
  0xf4   : > { %v736_v57 = vpop.f32.mrf.mxu1  ;;  %v683_v58 = vadd.f32 %v1601_v46, %v676_v56 }
  0xf6   : > { %v743_v60 = vadd.f32 %v736_v57, %v683_v58 }
  0xf8   : > { %747 = vst [vmem:[#allocation2 + $0x10] sm:$0xff] %v743_v60 }
  0xfb   : > { %v678_v61 = vpop.f32.mrf.mxu0 }
  0xfc   : > { %v684_v62 = vadd.f32 %v1601_v46, %v678_v61  ;;  %v738_v63 = vpop.f32.mrf.mxu1 }
  0xfe   : > { %v744_v0 = vadd.f32 %v738_v63, %v684_v62 }
 0x100   : > { %748 = vst [vmem:[#allocation2 + $0x18] sm:$0xff] %v744_v0 }
 0x107   : > { %v754_v1 = vld [vmem:[%s753_s10] sm:$0xff]  ;;  %s1075_s10 = smul.u32 %s1733_s19, %s1074_s24 }
 0x108   : > { %v785_v2 = vadd.f32 %v781_v54, %v754_v1  ;;  %v843_v32 = vld [vmem:[%s842_s2] sm:$0xff] }
 0x109   : > { %v921_v0 = vld [vmem:[%s920_s20] sm:$0xff] }
 0x10a   : > { %1602 = vtanh.f32 %v785_v2  ;;  %v1478_v5 = vmul.f32 -1.442695, %v785_v2 }
 0x10c   : > { %1604 = vpow2.f32 %v1478_v5 }
 0x110   : > { %v1603_v3 = vpop.eup %1602 }
 0x111   : > { %813 = vrot.lane.b32.xlu0 %v1603_v3, %s1747_s18 }
 0x112   : > { %v1605_v6 = vpop.eup %1604 }
 0x113   : > { %v789_v7 = vadd.f32 1.0, %v1605_v6 }
 0x115   : > { %1606 = vrcp.f32 %v789_v7  ;;  %v801_v13 = vand.u32 2147483648, %v789_v7  ;;  %vm795_vm3 = vweird.f32 %v789_v7  ;;  %v799_v14 = vand.u32 2147483647, %v789_v7 }
 0x117   : > { %v802_v16 = vor.u32 1.1754944e-38, %v801_v13  ;;  %vm800_vm5 = vcmp.eq.f32.partialorder %v799_v14, 8.507059e+37 }
 0x119   : > { %808 = vrot.lane.b32.xlu0 %v806_v4, %s1748_s26 }
 0x11b   : > { %v1607_v8 = vpop.eup %1606 }
 0x11c   : > { %v791_v9 = vmul.f32 %v1607_v8, %v789_v7  ;;  %vm796_vm2 = vweird.f32 %v1607_v8 }
 0x11d   : > { %vm797_vm4 = vmor %vm795_vm3, %vm796_vm2 }
 0x11e   : > { %v792_v10 = vsub.f32 1.0, %v791_v9 }
 0x120   : > { %v793_v11 = vmul.f32 %v1607_v8, %v792_v10 }
 0x122   : > { %v794_v12 = vadd.f32 %v1607_v8, %v793_v11 }
 0x124   : > { %v798_v15 = vsel %vm797_vm4, %v1607_v8, %v794_v12 }
 0x125   : > { %v803_v18 = vsel %vm800_vm5, %v802_v16, %v798_v15 }
 0x183   : > { %v814_v17 = vpop.permute.xlu0 %813 }
 0x184   : > { %v816_v19 = vmul.f32 %v814_v17, %v803_v18 }
 0x186   : > { %818 = vrot.lane.b32.xlu1 %v816_v19, %s1748_s26 }
 0x18b   : > { %v809_v20 = vpop.permute.xlu0 %808 }
 0x18c   : > { %v811_v21 = vmul.f32 %v809_v20, %v803_v18 }
 0x1f8   : > { %v819_v22 = vpop.permute.xlu1 %818 }
 0x1f9   : > { %v821_v23 = vadd.f32 %v819_v22, %v811_v21 }
 0x1fb   : > { %1608 = vtanh.f32 %v821_v23 }
 0x201   : > { %v1609_v24 = vpop.eup %1608 }
 0x202   : > { %824 = vrot.lane.b32.xlu1 %v1609_v24, %s1747_s18 }
 0x274   : > { %v825_v25 = vpop.permute.xlu1 %824 }
 0x275   : > { %v827_v26 = vmul.f32 %v825_v25, %v803_v18 }
 0x277   : > { %834 = vrot.lane.b32.xlu2 %v827_v26, %s1748_s26 }
 0x27f   : > { %829 = vrot.lane.b32.xlu2 %v821_v23, %s1749_s16 }
 0x2d1   : > { %v835_v27 = vpop.permute.xlu2 %834 }
 0x2d2   : > { %837 = vst.msk [vmem:[#allocation3] sm:$0xff] %vm655_vm1, %v835_v27 }
 0x2d3   : > { %839 = vst.msk [vmem:[%s838_s28] sm:$0xff] %vm655_vm1, %v835_v27  ;;  %s2060_s28 = sadd.s32 %s2206_s22, %s1075_s10 }
 0x2d4   : > { %p1490_p5 = scmp.ne.s32.totalorder %s2060_s28, 1 }
 0x2d9   : > { %v830_v28 = vpop.permute.xlu2 %829  ;;  %v844_v29 = vld [vmem:[#allocation3] sm:$0xff] }
 0x2da   : > { %832 = vst.msk [vmem:[#allocation4] sm:$0xff] %vm655_vm1, %v830_v28  ;;  %v845_v30 = vpack.c.bf16 %v844_v29, %v844_v29 }
 0x2dc   : > { %1480 = vmatmul.msk.bf16.vlgmr.msra.gmra.mxu3 %vm655_vm1, %v845_v30 }
 0x2e1   : > { %v883_v31 = vld [vmem:[#allocation4] sm:$0xff] }
 0x2e2   : > { %885 = vrot.lane.b32.xlu1 %v883_v31, %s1748_s26 }
 0x354   : > { %v886_v52 = vpop.permute.xlu1 %885 }
 0x35f   : > { %v858_v33 = vpop.f32.mrf.mxu3 }
 0x360   : > { %v862_v34 = vadd.f32 %v858_v33, %v843_v32  ;;  %v999_v32 = vld [vmem:[%s998_s11] sm:$0xff] }
 0x362   : > { %1610 = vtanh.f32 %v862_v34  ;;  %v1481_v37 = vmul.f32 -1.442695, %v862_v34 }
 0x364   : > { %1612 = vpow2.f32 %v1481_v37 }
 0x367   : > { %v860_v35 = vpop.f32.mrf.mxu3 }
 0x368   : > { %v1611_v36 = vpop.eup %1610 }
 0x369   : > { %890 = vrot.lane.b32.xlu0 %v1611_v36, %s1747_s18 }
 0x36a   : > { %v1613_v38 = vpop.eup %1612 }
 0x36b   : > { %v866_v39 = vadd.f32 1.0, %v1613_v38 }
 0x36d   : > { %1614 = vrcp.f32 %v866_v39  ;;  %v878_v45 = vand.u32 2147483648, %v866_v39  ;;  %vm872_vm7 = vweird.f32 %v866_v39  ;;  %v876_v46 = vand.u32 2147483647, %v866_v39 }
 0x36f   : > { %v879_v48 = vor.u32 1.1754944e-38, %v878_v45  ;;  %vm877_vm9 = vcmp.eq.f32.partialorder %v876_v46, 8.507059e+37 }
 0x373   : > { %v1615_v40 = vpop.eup %1614 }
 0x374   : > { %v868_v41 = vmul.f32 %v1615_v40, %v866_v39  ;;  %vm873_vm6 = vweird.f32 %v1615_v40 }
 0x375   : > { %vm874_vm8 = vmor %vm872_vm7, %vm873_vm6 }
 0x376   : > { %v869_v42 = vsub.f32 1.0, %v868_v41 }
 0x378   : > { %v870_v43 = vmul.f32 %v1615_v40, %v869_v42 }
 0x37a   : > { %v871_v44 = vadd.f32 %v1615_v40, %v870_v43 }
 0x37c   : > { %v875_v47 = vsel %vm874_vm8, %v1615_v40, %v871_v44 }
 0x37d   : > { %v880_v50 = vsel %vm877_vm9, %v879_v48, %v875_v47 }
 0x37e   : > { %v888_v53 = vmul.f32 %v886_v52, %v880_v50 }
 0x3db   : > { %v891_v49 = vpop.permute.xlu0 %890 }
 0x3dc   : > { %v893_v51 = vmul.f32 %v891_v49, %v880_v50 }
 0x3de   : > { %895 = vrot.lane.b32.xlu2 %v893_v51, %s1748_s26 }
 0x438   : > { %v896_v54 = vpop.permute.xlu2 %895 }
 0x439   : > { %v898_v55 = vadd.f32 %v896_v54, %v888_v53 }
 0x43b   : > { %1616 = vtanh.f32 %v898_v55  ;;  %906 = vrot.lane.b32.xlu2 %v898_v55, %s1749_s16 }
 0x441   : > { %v1617_v56 = vpop.eup %1616 }
 0x442   : > { %901 = vrot.lane.b32.xlu0 %v1617_v56, %s1747_s18 }
 0x495   : > { %v907_v57 = vpop.permute.xlu2 %906 }
 0x496   : > { %909 = vst.msk [vmem:[#allocation4] sm:$0xff] %vm655_vm1, %v907_v57 }
 0x49d   : > { %v961_v60 = vld [vmem:[#allocation4] sm:$0xff] }
 0x4b4   : > { %v902_v58 = vpop.permute.xlu0 %901 }
 0x4b5   : > { %v904_v59 = vmul.f32 %v902_v58, %v880_v50 }
 0x4b7   : > { %911 = vrot.lane.b32.xlu1 %v904_v59, %s1748_s26 }
 0x4bf   : > { %963 = vrot.lane.b32.xlu1 %v961_v60, %s1748_s26 }
 0x529   : > { %v912_v61 = vpop.permute.xlu1 %911 }
 0x52a   : > { %914 = vst.msk [vmem:[#allocation3] sm:$0xff] %vm655_vm1, %v912_v61 }
 0x52b   : > { %916 = vst.msk [vmem:[%s915_s13] sm:$0xff] %vm655_vm1, %v912_v61 }
 0x531   : > { %v922_v62 = vld [vmem:[#allocation3] sm:$0xff]  ;;  %v964_v20 = vpop.permute.xlu1 %963 }
 0x532   : > { %v923_v63 = vpack.c.bf16 %v922_v62, %v922_v62 }
 0x534   : > { %1484 = vmatmul.msk.bf16.vlgmr.msrb.gmra.mxu2 %vm655_vm1, %v923_v63 }
 0x5b7   : > { %v936_v1 = vpop.f32.mrf.mxu2 }
 0x5b8   : > { %v940_v2 = vadd.f32 %v936_v1, %v921_v0 }
 0x5ba   : > { %1618 = vtanh.f32 %v940_v2  ;;  %v1485_v5 = vmul.f32 -1.442695, %v940_v2 }
 0x5bc   : > { %1620 = vpow2.f32 %v1485_v5 }
 0x5bf   : > { %v938_v3 = vpop.f32.mrf.mxu2 }
 0x5c0   : > { %v1619_v4 = vpop.eup %1618 }
 0x5c1   : > { %968 = vrot.lane.b32.xlu0 %v1619_v4, %s1747_s18 }
 0x5c2   : > { %v1621_v6 = vpop.eup %1620 }
 0x5c3   : > { %v944_v7 = vadd.f32 1.0, %v1621_v6 }
 0x5c5   : > { %1622 = vrcp.f32 %v944_v7  ;;  %v956_v13 = vand.u32 2147483648, %v944_v7  ;;  %vm950_vm11 = vweird.f32 %v944_v7  ;;  %v954_v14 = vand.u32 2147483647, %v944_v7 }
 0x5c7   : > { %v957_v16 = vor.u32 1.1754944e-38, %v956_v13  ;;  %vm955_vm13 = vcmp.eq.f32.partialorder %v954_v14, 8.507059e+37 }
 0x5cb   : > { %v1623_v8 = vpop.eup %1622 }
 0x5cc   : > { %v946_v9 = vmul.f32 %v1623_v8, %v944_v7  ;;  %vm951_vm10 = vweird.f32 %v1623_v8 }
 0x5cd   : > { %vm952_vm12 = vmor %vm950_vm11, %vm951_vm10 }
 0x5ce   : > { %v947_v10 = vsub.f32 1.0, %v946_v9 }
 0x5d0   : > { %v948_v11 = vmul.f32 %v1623_v8, %v947_v10 }
 0x5d2   : > { %v949_v12 = vadd.f32 %v1623_v8, %v948_v11 }
 0x5d4   : > { %v953_v15 = vsel %vm952_vm12, %v1623_v8, %v949_v12 }
 0x5d5   : > { %v958_v18 = vsel %vm955_vm13, %v957_v16, %v953_v15 }
 0x5d6   : > { %v966_v21 = vmul.f32 %v964_v20, %v958_v18 }
 0x633   : > { %v969_v17 = vpop.permute.xlu0 %968 }
 0x634   : > { %v971_v19 = vmul.f32 %v969_v17, %v958_v18 }
 0x636   : > { %973 = vrot.lane.b32.xlu2 %v971_v19, %s1748_s26 }
 0x690   : > { %v974_v22 = vpop.permute.xlu2 %973 }
 0x691   : > { %v976_v23 = vadd.f32 %v974_v22, %v966_v21 }
 0x693   : > { %1624 = vtanh.f32 %v976_v23  ;;  %984 = vrot.lane.b32.xlu2 %v976_v23, %s1749_s16 }
 0x699   : > { %v1625_v24 = vpop.eup %1624 }
 0x69a   : > { %979 = vrot.lane.b32.xlu0 %v1625_v24, %s1747_s18 }
 0x6ed   : > { %v985_v25 = vpop.permute.xlu2 %984 }
 0x6ee   : > { %987 = vst.msk [vmem:[#allocation4] sm:$0xff] %vm655_vm1, %v985_v25 }
 0x6f5   : > { %v1039_v28 = vld [vmem:[#allocation4] sm:$0xff] }
 0x70c   : > { %v980_v26 = vpop.permute.xlu0 %979 }
 0x70d   : > { %v982_v27 = vmul.f32 %v980_v26, %v958_v18 }
 0x70f   : > { %989 = vrot.lane.b32.xlu1 %v982_v27, %s1748_s26 }
 0x717   : > { %1041 = vrot.lane.b32.xlu1 %v1039_v28, %s1748_s26 }
 0x781   : > { %v990_v29 = vpop.permute.xlu1 %989 }
 0x782   : > { %992 = vst.msk [vmem:[#allocation3] sm:$0xff] %vm655_vm1, %v990_v29 }
 0x783   : > { %994 = vst.msk [vmem:[%s993_s21] sm:$0xff] %vm655_vm1, %v990_v29 }
 0x789   : > { %v1000_v30 = vld [vmem:[#allocation3] sm:$0xff]  ;;  %v1042_v52 = vpop.permute.xlu1 %1041 }
 0x78a   : > { %v1001_v31 = vpack.c.bf16 %v1000_v30, %v1000_v30 }
 0x78c   : > { %1487 = vmatmul.msk.bf16.vlgmr.msrb.gmra.mxu3 %vm655_vm1, %v1001_v31 }
 0x80f   : > { %v1014_v33 = vpop.f32.mrf.mxu3 }
 0x810   : > { %v1018_v34 = vadd.f32 %v1014_v33, %v999_v32 }
 0x812   : > { %1626 = vtanh.f32 %v1018_v34  ;;  %v1488_v37 = vmul.f32 -1.442695, %v1018_v34 }
 0x814   : > { %1628 = vpow2.f32 %v1488_v37 }
 0x817   : > { %v1016_v35 = vpop.f32.mrf.mxu3 }
 0x818   : > { %v1627_v36 = vpop.eup %1626 }
 0x819   : > { %1046 = vrot.lane.b32.xlu0 %v1627_v36, %s1747_s18 }
 0x81a   : > { %v1629_v38 = vpop.eup %1628 }
 0x81b   : > { %v1022_v39 = vadd.f32 1.0, %v1629_v38 }
 0x81d   : > { %1630 = vrcp.f32 %v1022_v39  ;;  %v1034_v45 = vand.u32 2147483648, %v1022_v39  ;;  %vm1028_vm15 = vweird.f32 %v1022_v39  ;;  %v1032_v46 = vand.u32 2147483647, %v1022_v39 }
 0x81f   : > { %v1035_v48 = vor.u32 1.1754944e-38, %v1034_v45  ;;  %vm1033_vm2 = vcmp.eq.f32.partialorder %v1032_v46, 8.507059e+37 }
 0x823   : > { %v1631_v40 = vpop.eup %1630 }
 0x824   : > { %v1024_v41 = vmul.f32 %v1631_v40, %v1022_v39  ;;  %vm1029_vm14 = vweird.f32 %v1631_v40 }
 0x825   : > { %vm1030_vm0 = vmor %vm1028_vm15, %vm1029_vm14 }
 0x826   : > { %v1025_v42 = vsub.f32 1.0, %v1024_v41 }
 0x828   : > { %v1026_v43 = vmul.f32 %v1631_v40, %v1025_v42 }
 0x82a   : > { %v1027_v44 = vadd.f32 %v1631_v40, %v1026_v43 }
 0x82c   : > { %v1031_v47 = vsel %vm1030_vm0, %v1631_v40, %v1027_v44 }
 0x82d   : > { %v1036_v50 = vsel %vm1033_vm2, %v1035_v48, %v1031_v47 }
 0x82e   : > { %v1044_v53 = vmul.f32 %v1042_v52, %v1036_v50 }
 0x88b   : > { %v1047_v49 = vpop.permute.xlu0 %1046 }
 0x88c   : > { %v1049_v51 = vmul.f32 %v1047_v49, %v1036_v50 }
 0x88e   : > { %1051 = vrot.lane.b32.xlu2 %v1049_v51, %s1748_s26 }
 0x8e8   : > { %v1052_v54 = vpop.permute.xlu2 %1051 }
 0x8e9   : > { %v1054_v55 = vadd.f32 %v1052_v54, %v1044_v53 }
 0x8eb   : > { %1632 = vtanh.f32 %v1054_v55  ;;  %1062 = vrot.lane.b32.xlu1 %v1054_v55, %s1749_s16 }
 0x8f1   : > { %v1633_v56 = vpop.eup %1632 }
 0x8f2   : > { %1057 = vrot.lane.b32.xlu0 %v1633_v56, %s1747_s18 }
 0x95d   : > { %v1063_v57 = vpop.permute.xlu1 %1062 }
 0x95e   : > { %1065 = vst.msk [vmem:[#allocation4] sm:$0xff] %vm655_vm1, %v1063_v57 }
 0x964   : > { %v1058_v58 = vpop.permute.xlu0 %1057 }
 0x965   : > { %v1060_v59 = vmul.f32 %v1058_v58, %v1036_v50 }
 0x967   : > { %1067 = vrot.lane.b32.xlu2 %v1060_v59, %s1748_s26 }
 0x9bf   : > { %1080 = sbr.rel (%p1490_p5) target bundleno = 2508 (0x9cc), region = 94 }
 0x9c1   : > { %v1068_v60 = vpop.permute.xlu2 %1067 }
 0x9c2   : > { %1070 = vst.msk [vmem:[#allocation3] sm:$0xff] %vm655_vm1, %v1068_v60 }
 0x9c3   : > { %1072 = vst.msk [vmem:[%s1071_s17] sm:$0xff] %vm655_vm1, %v1068_v60 }
 0x9ca   : > { %v1491_v61 = vld [vmem:[%s1963_s23 + $0x18] sm:$0xff] }
 0x9cb   : > { %1083 = vst.msk [vmem:[#allocation5] sm:$0xff] %vm655_vm1, %v1491_v61 }
 0x9cc PF: > { %s2207_s18 = sld [smem:[#allocation13_spill]] }
 0x9d2   : > { %p1492_p6 = scmp.ne.s32.totalorder %s2207_s18, 1 }
 0x9d4   : > { %1087 = sbr.rel (%p1492_p6) target bundleno = 2643 (0xa53), region = 98 }
 0x9d9   : > { %v1088_v62 = vld [vmem:[#allocation3] sm:$0xff]  ;;  %v1090_v63 = vld [vmem:[#allocation4] sm:$0xff]  ;;  %v1092_v0 = vld [vmem:[#allocation5] sm:$0xff]  ;;  %vm1101_vm3 = vcmask 7168  }
 0x9da   : > { %1089 = vst.msk [vmem:[%s590_s1] sm:$0xff] %vm655_vm1, %v1088_v62  ;;  %v1634_v1 = vld [vmem:[%s581_s0] ss:$0 sm:$0xff] }
 0x9db   : > { %1091 = vst.msk [vmem:[%s594_s12] sm:$0xff] %vm655_vm1, %v1090_v63  ;;  %v1097_v2 = vmul.f32 %v1634_v1, %v1092_v0 }
 0x9dd   : > { %v1098_v3 = vsel %vm655_vm1, %v1097_v2, 0.0 }
 0x9de   : > { %1099 = vadd.xlane.f32.xlu0 %v1098_v3 }
 0xa51   : > { %v1100_v4 = vpop.xlane.xlu0 %1099 }
 0xa52   : > { %1102 = vst.msk [vmem:[%s598_s4] sm:$0xff] %vm1101_vm3, %v1100_v4 }
 0xa53 PF: > { %s1495_s0 = sshll.u32 %s2060_s28, 2  ;;  %s1496_s30 = sshll.u32 %s1733_s19, 3 }
 0xa54   : > { %s1134_s12 = sshll.u32 %s1963_s23, 4  ;;  %s1131_s11 = sadd.s32 %s1496_s30, %s1495_s0  ;;  %s1135_s12 = int_to_ptr.vmem [resolvable:$true] %s1134_s12 }
 0xa55   : > { %s1497_s22 = sshll.u32 %s1131_s11, 3  ;;  %s2211_s10 = sld [smem:[#allocation27_spill]] }
 0xa56   : > { %s2212_s9 = sand.u32 1, %s1713_s14  }
 0xa57   : > { %s1104_s4 = scalar_lea.sflag [#allocation8], %s2212_s9 }
 0xa5b   : > { %s1133_s17 = scalar_lea.hbm %s2211_s10, %s1497_s22  ;;  %s1655_s28 = scalar_lea.hbm %s2211_s10, 128 }
 0xa5c   : > { %s1136_s18 = sshll.u32 %s1133_s17, 4  ;;  %s1137_s18 = int_to_ptr.hbm [resolvable:$true] %s1136_s18 }
 0xa5d   : > { %s1649_s25 = sshra.s32 %s1137_s18, 4  ;;  %s1650_s25 = int_to_ptr.hbm [resolvable:$true] %s1649_s25 }
 0xa5e   : > { %s1651_s26 = scalar_lea.hbm %s1650_s25, 32  ;;  %p1656_p11 = scmp.lt.s32.totalorder %s1650_s25, %s2211_s10 }
 0xa5f   : > { %p1652_p7 = scmp.ne.s32.totalorder %s1650_s25, %s1651_s26  ;;  %p1657_p13 = scmp.lt.s32.totalorder %s1655_s28, %s1651_s26 }
 0xa61   : > { %p1653_p8 = pnand %p1652_p7, %p1887_p10  ;;  %p1658_p0 = por %p1657_p13, %p1656_p11 }
 0xa63   : > { %p1654_p9 = pneg %p1653_p8 }
 0xa65   : > { %p1659_p1 = pnand %p1658_p0, %p1654_p9 }
 0xa67   : > { %1662 = shalt.err (!%p1659_p1)
}
 0xa68   : > { %s1750_s2 = smov 128   ;;  %s1751_s13 = smov 8  }
 0xa69   : > { %1509 = dma.vmem_to_hbm [thread:$0]  (%p1887_p10), %s1135_s12, 512, %s1137_s18, %s1104_s4, %s1750_s2, %s1750_s2, %s1751_s13  }
 0xa6a PF: > { %s2213_s15 = sld [smem:[#allocation16_spill]] }
 0xa6b   : > { %s2214_s20 = sld [smem:[#allocation10_spill]] }
 0xa70   : > { %p1515_p2 = scmp.ge.s32.totalorder %s2213_s15, 2 }
 0xa71   : > { %s1160_s1 = sand.u32 1, %s2214_s20  }
 0xa72   : > { %p1512_p3 = pnand %p1515_p2, %p1899_p12  ;;  %s1161_s0 = scalar_lea.sflag [#allocation8], %s1160_s1 }
 0xa74   : > { %p1513_p4 = pneg %p1512_p3 }
 0xa76   : > { %1704 = dma.done.wait (%p1513_p4), %s1161_s0, 512  }
 0xa77   : > { %1706 = vsyncadd (%p1513_p4), %s1161_s0, 4294966784  ;;  %s24_s22 = sadd.s32 1, %s2213_s15   ;;  %s2216_s30 = sld [smem:[#allocation11_spill]] }
 0xa78   : > { %p21_p5 = scmp.ge.s32.totalorder %s24_s22, 6   ;;  %s2217_s15 = sld [smem:[#allocation21_spill]] }
 0xa79   : > { %s2218_s16 = sld [smem:[#allocation12_spill]]  ;;  %s2224_s13 = smov %s1713_s14 }
 0xa7a   : > { %s2219_s17 = sld [smem:[#allocation20_spill]]  ;;  %23 = sbr.rel (!%p21_p5) target bundleno = 14 (0xe), region = 202 }
 0xa7b   : > { %s2220_s18 = sld [smem:[#allocation14_spill]] }
 0xa7c   : > { %s2221_s19 = sld [smem:[#allocation15_spill]] }
 0xa7d   : > { %s2222_s20 = sld [smem:[#allocation17_spill]]  ;;  %s2225_s14 = smov %s2216_s30 }
 0xa7e   : > { %s2223_s21 = sld [smem:[#allocation18_spill]] }
 0xa7f   :  { %1188 = vsyncpa [#allocation8], 1 }
 0xa80   :  { %1190 = vsyncpa [#allocation8 + $0x1], 1 }

</bundles_post_ra>
